<compile_context>
chip_gen: v5e
topology: v5e:2x2
jax: 0.10.0
libtpu: 0.0.40
codegen_flags: <defaults>
</compile_context>

<pallas_src>
import functools

import jax
import jax.numpy as jnp
from jax.experimental import pallas as pl
from jax.experimental.pallas import tpu as pltpu


def _round_up(n, m):
    return ((n + m - 1) // m) * m


def bilstm_kernel(x_ref, w_ih_ref, w_hh_ref, b_ref, w_lin_ref, b_lin_ref,
                  out_ref, xw_ref, *, T, B, F, GP):
    # Shapes (all VMEM-resident; every gate occupies its own GP=128-lane block):
    #   x_ref:     (T*B, F)       time-major inputs, flattened over (t, b)
    #   w_ih_ref:  (F, 4*GP)      weight_ih_l0.T, gate-wise lane-padded
    #   w_hh_ref:  (F, B, 4*GP)   weight_hh_l0.T row per hidden unit, lane-padded,
    #                             batch-replicated (plain aligned per-unit loads)
    #   b_ref:     (1, 4*GP)      bias_ih + bias_hh, lane-padded
    #   w_lin_ref: (T, B, GP)     linear-weight row per step, replicated over batch
    #   b_lin_ref: (1, 1)
    #   out_ref:   (B, 1)
    #   xw_ref:    (T*B, 4*GP)    scratch for the hoisted input projection

    # Hoisted input projection (the only MXU op in the kernel): one (T*B, F) x
    # (F, 4*GP) matmul + fused bias, computed once outside the serial recurrence.
    xw_ref[...] = (
        jnp.dot(x_ref[...], w_ih_ref[...], preferred_element_type=jnp.float32)
        + b_ref[...]
    )

    # Loop-invariants hoisted out of the unrolled loop (they'd otherwise be re-issued
    # per step: JAX does not CSE loads/broadcasts across the unrolled body).
    whh = [w_hh_ref[k] for k in range(F)]                       # F x (B, 4*GP)
    lane = jax.lax.broadcasted_iota(jnp.int32, (B, GP), 1)
    hsel = [(lane == k).astype(jnp.float32) for k in range(F)]  # one-hot lane masks

    h = jnp.zeros((B, GP), jnp.float32)
    c = jnp.zeros((B, GP), jnp.float32)
    acc = jnp.zeros((B, GP), jnp.float32)   # per-lane linear accumulator (VPU)

    # Fully unrolled recurrence (T static & tiny): static, vreg-aligned slices and no
    # loop-control overhead on the serial critical path.
    for t in range(T):
        # Recurrent contribution h @ W_hh^T without the MXU: pull each live hidden
        # unit out with a masked lane-reduce (XLU slot, idle otherwise) and FMA it
        # against the padded W_hh row slab (VPU).  Balanced add tree for the terms.
        terms = []
        for k in range(F):
            hk = jnp.sum(h * hsel[k], axis=-1, keepdims=True)   # (B, 1)
            terms.append(hk * whh[k])                           # (B, 4*GP)
        while len(terms) > 1:
            nxt = [terms[i] + terms[i + 1] for i in range(0, len(terms) - 1, 2)]
            if len(terms) % 2:
                nxt.append(terms[-1])
            terms = nxt
        gates = xw_ref[t * B:(t + 1) * B, :] + terms[0]         # (B, 4*GP)

        # Lane-aligned gate blocks, PyTorch gate order [i, f, g, o].
        # Padded lanes see gates == 0 -> c, h stay exactly 0 there.
        i_g = jax.nn.sigmoid(gates[:, 0 * GP:1 * GP])
        f_g = jax.nn.sigmoid(gates[:, 1 * GP:2 * GP])
        g_g = jnp.tanh(gates[:, 2 * GP:3 * GP])
        o_g = jax.nn.sigmoid(gates[:, 3 * GP:4 * GP])
        c = f_g * c + i_g * g_g
        h = o_g * jnp.tanh(c)
        # Dropout(0.6) is identity at inference time.
        # TODO(synk): training-mode dropout (random mask + 1/(1-p) scaling) not implemented.
        # Linear-layer contribution of step t via VPU multiply-accumulate; the
        # cross-lane reduction happens once after the loop.
        acc = acc + h * w_lin_ref[t]

    # Single XLU reduction + bias.  (B, 1) store is lane-narrow but negligible at B=8.
    out_ref[...] = jnp.sum(acc, axis=-1, keepdims=True) + b_lin_ref[...]


def pack_params(w_ih, w_hh, b_ih, b_hh, w_lin, b_lin, *, T, B):
    """One-time packing of PyTorch-layout LSTM/Linear parameters into kernel layout.

    Done once at model-setup time (not per forward call): the kernel itself is
    ~1 microsecond, so re-running the pad/transpose/broadcast XLA ops every call
    would dominate end-to-end wall clock.
    """
    F = w_ih.shape[1]
    assert w_ih.shape == (4 * F, F) and w_hh.shape == (4 * F, F)
    GP = _round_up(F, 128)          # per-gate lane pitch (vreg aligned)
    f32 = jnp.float32

    w_ih_t = jnp.transpose(w_ih).astype(f32)      # (F, 4F)
    w_hh_t = jnp.transpose(w_hh).astype(f32)      # (F, 4F)
    bias = (b_ih + b_hh).astype(f32)              # (4F,)

    # Pad each gate's F output columns into its own 128-lane block (order [i, f, g, o]).
    # Padded lanes are zero, so padded gate pre-activations are exactly 0 and the
    # padded lanes of c/h stay exactly 0 through the whole recurrence.
    w_ih_p = jnp.zeros((F, 4 * GP), f32)
    w_hh_p = jnp.zeros((F, 4 * GP), f32)
    b_p = jnp.zeros((1, 4 * GP), f32)
    for g in range(4):
        w_ih_p = w_ih_p.at[:, g * GP:g * GP + F].set(w_ih_t[:, g * F:(g + 1) * F])
        w_hh_p = w_hh_p.at[:, g * GP:g * GP + F].set(w_hh_t[:, g * F:(g + 1) * F])
        b_p = b_p.at[0, g * GP:g * GP + F].set(bias[g * F:(g + 1) * F])

    # Recurrent weight as one row-slab per hidden unit, replicated over the batch
    # sublanes so the kernel's per-unit access is a plain aligned vector load.
    w_hh_rep = jnp.broadcast_to(w_hh_p[:, None, :], (F, B, 4 * GP))

    # Linear weight (1, T*F) -> per-step (T, F) rows (matching the view(B,-1) flatten
    # order), lane-padded to GP and replicated over batch sublanes.
    w_lin_rows = jnp.zeros((T, GP), f32).at[:, :F].set(w_lin.reshape(T, F).astype(f32))
    w_lin_rep = jnp.broadcast_to(w_lin_rows[:, None, :], (T, B, GP))
    b_lin_r = b_lin.reshape(1, 1).astype(f32)

    return (w_ih_p, w_hh_rep, b_p, w_lin_rep, b_lin_r)


def _bilstm_forward(x, packed):
    """x: (B, T, F) float32 (PyTorch batch_first layout). Returns (B,)."""
    w_ih_p, w_hh_rep, b_p, w_lin_rep, b_lin_r = packed
    B, T, F = x.shape
    GP = w_lin_rep.shape[-1]
    f32 = jnp.float32

    x_flat = jnp.transpose(x, (1, 0, 2)).reshape(T * B, F).astype(f32)   # (T*B, F)

    vmem = pltpu.MemorySpace.VMEM
    kernel = functools.partial(bilstm_kernel, T=T, B=B, F=F, GP=GP)
    out = pl.pallas_call(
        kernel,
        out_shape=jax.ShapeDtypeStruct((B, 1), jnp.float32),
        in_specs=[pl.BlockSpec(memory_space=vmem)] * 6,
        out_specs=pl.BlockSpec(memory_space=vmem),
        scratch_shapes=[pltpu.VMEM((T * B, 4 * GP), jnp.float32)],
    )(x_flat, w_ih_p, w_hh_rep, b_p, w_lin_rep, b_lin_r)
    # NOTE: deliberately no grid / dimension_semantics: at B=8, T=10 the kernel is
    # latency-bound and per-grid-step / core-split overhead would be a regression.
    return out.reshape(-1)


bilstm_forward = jax.jit(_bilstm_forward)


def bilstm_reference(x, w_ih, w_hh, b_ih, b_hh, w_lin, b_lin):
    """Plain-JAX reference matching torch.nn.LSTM + Linear semantics."""
    B, T, F = x.shape
    b = b_ih + b_hh

    def cell(carry, x_t):
        h, c = carry
        gates = x_t @ w_ih.T + h @ w_hh.T + b
        i_g = jax.nn.sigmoid(gates[:, 0 * F:1 * F])
        f_g = jax.nn.sigmoid(gates[:, 1 * F:2 * F])
        g_g = jnp.tanh(gates[:, 2 * F:3 * F])
        o_g = jax.nn.sigmoid(gates[:, 3 * F:4 * F])
        c_new = f_g * c + i_g * g_g
        h_new = o_g * jnp.tanh(c_new)
        return (h_new, c_new), h_new

    h0 = jnp.zeros((B, F), jnp.float32)
    c0 = jnp.zeros((B, F), jnp.float32)
    _, hs = jax.lax.scan(cell, (h0, c0), jnp.transpose(x, (1, 0, 2)))  # (T, B, F)
    flat = jnp.transpose(hs, (1, 0, 2)).reshape(B, T * F)
    return (flat @ w_lin.T + b_lin).reshape(-1)


if __name__ == "__main__":
    feature_num = 4     # F
    time_window = 10    # T
    batch = 8           # B

    key = jax.random.PRNGKey(0)
    ks = jax.random.split(key, 7)
    F, T, B = feature_num, time_window, batch

    # Deterministic synthetic parameters (same shapes as the PyTorch module).
    w_ih = 0.2 * jax.random.normal(ks[0], (4 * F, F), jnp.float32)   # weight_ih_l0
    w_hh = 0.2 * jax.random.normal(ks[1], (4 * F, F), jnp.float32)   # weight_hh_l0
    b_ih = 0.1 * jax.random.normal(ks[2], (4 * F,), jnp.float32)     # bias_ih_l0
    b_hh = 0.1 * jax.random.normal(ks[3], (4 * F,), jnp.float32)     # bias_hh_l0
    w_lin = 0.2 * jax.random.normal(ks[4], (1, T * F), jnp.float32)  # linear.weight
    b_lin = 0.1 * jax.random.normal(ks[5], (1,), jnp.float32)        # linear.bias

    x = jax.random.normal(ks[6], (B, T, F), jnp.float32)

    packed = pack_params(w_ih, w_hh, b_ih, b_hh, w_lin, b_lin, T=T, B=B)  # once

    out = bilstm_forward(x, packed)
    out = jax.block_until_ready(out)

    ref = bilstm_reference(x, w_ih, w_hh, b_ih, b_hh, w_lin, b_lin)
    assert out.shape == (B,)
    assert jnp.allclose(out, ref, atol=1e-5, rtol=1e-5), (out, ref)

    print("KERNEL_OK")
</pallas_src>

<mosaic_0001>
module attributes {stable_mosaic.version = 11 : i64} {
  func.func @bilstm_kernel(%arg0: memref<80x4xf32, #tpu.memory_space<vmem>>, %arg1: memref<4x512xf32, #tpu.memory_space<vmem>>, %arg2: memref<4x8x512xf32, #tpu.memory_space<vmem>>, %arg3: memref<1x512xf32, #tpu.memory_space<vmem>>, %arg4: memref<10x8x128xf32, #tpu.memory_space<vmem>>, %arg5: memref<1x1xf32, #tpu.memory_space<vmem>>, %arg6: memref<8x1xf32, #tpu.memory_space<vmem>>, %arg7: memref<80x512xf32, #tpu.memory_space<vmem>>) attributes {dimension_semantics = [], scalar_prefetch = 0 : i64, scratch_operands = 1 : i64, tpu.core_type = #tpu.core_type<tc>} {
    %c0 = arith.constant 0 : index
    %c0_0 = arith.constant 0 : index
    %0 = vector.load %arg0[%c0, %c0_0] : memref<80x4xf32, #tpu.memory_space<vmem>>, vector<80x4xf32>
    %c0_1 = arith.constant 0 : index
    %c0_2 = arith.constant 0 : index
    %1 = vector.load %arg1[%c0_1, %c0_2] : memref<4x512xf32, #tpu.memory_space<vmem>>, vector<4x512xf32>
    %cst = arith.constant dense<0.000000e+00> : vector<80x512xf32>
    %2 = tpu.matmul %0, %1, %cst {dimension_numbers = #tpu.dot_dimension_numbers<[1], [0], [0], [1], [0, 0, 1, 1], [], []>} : vector<80x4xf32>, vector<4x512xf32>, vector<80x512xf32> -> vector<80x512xf32>
    %c0_3 = arith.constant 0 : index
    %c0_4 = arith.constant 0 : index
    %3 = vector.load %arg3[%c0_3, %c0_4] : memref<1x512xf32, #tpu.memory_space<vmem>>, vector<1x512xf32>
    %4 = vector.broadcast %3 : vector<1x512xf32> to vector<80x512xf32>
    %5 = arith.addf %2, %4 : vector<80x512xf32>
    %c0_5 = arith.constant 0 : index
    %c0_6 = arith.constant 0 : index
    %6 = vector.load %arg7[%c0_5, %c0_6] : memref<80x512xf32, #tpu.memory_space<vmem>>, vector<80x512xf32>
    tpu.vector_store %arg7[%c0_5, %c0_6], %5 {strides = array<i32>} : memref<80x512xf32, #tpu.memory_space<vmem>>, vector<80x512xf32>,
    %c0_7 = arith.constant 0 : index
    %c0_8 = arith.constant 0 : index
    %c0_9 = arith.constant 0 : index
    %7 = vector.load %arg2[%c0_7, %c0_8, %c0_9] : memref<4x8x512xf32, #tpu.memory_space<vmem>>, vector<1x8x512xf32>
    %8 = vector.shape_cast %7 : vector<1x8x512xf32> to vector<8x512xf32>
    %c1 = arith.constant 1 : index
    %c0_10 = arith.constant 0 : index
    %c0_11 = arith.constant 0 : index
    %9 = vector.load %arg2[%c1, %c0_10, %c0_11] : memref<4x8x512xf32, #tpu.memory_space<vmem>>, vector<1x8x512xf32>
    %10 = vector.shape_cast %9 : vector<1x8x512xf32> to vector<8x512xf32>
    %c2 = arith.constant 2 : index
    %c0_12 = arith.constant 0 : index
    %c0_13 = arith.constant 0 : index
    %11 = vector.load %arg2[%c2, %c0_12, %c0_13] : memref<4x8x512xf32, #tpu.memory_space<vmem>>, vector<1x8x512xf32>
    %12 = vector.shape_cast %11 : vector<1x8x512xf32> to vector<8x512xf32>
    %c3 = arith.constant 3 : index
    %c0_14 = arith.constant 0 : index
    %c0_15 = arith.constant 0 : index
    %13 = vector.load %arg2[%c3, %c0_14, %c0_15] : memref<4x8x512xf32, #tpu.memory_space<vmem>>, vector<1x8x512xf32>
    %14 = vector.shape_cast %13 : vector<1x8x512xf32> to vector<8x512xf32>
    %15 = tpu.iota {dimensions = array<i32: 1>} : vector<8x128xi32>
    %c0_i32 = arith.constant 0 : i32
    %16 = vector.broadcast %c0_i32 : i32 to vector<8x128xi32>
    %17 = arith.cmpi eq, %15, %16 : vector<8x128xi32>
    %18 = arith.extui %17 : vector<8x128xi1> to vector<8x128xi32>
    %19 = arith.sitofp %18 : vector<8x128xi32> to vector<8x128xf32>
    %c1_i32 = arith.constant 1 : i32
    %20 = vector.broadcast %c1_i32 : i32 to vector<8x128xi32>
    %21 = arith.cmpi eq, %15, %20 : vector<8x128xi32>
    %22 = arith.extui %21 : vector<8x128xi1> to vector<8x128xi32>
    %23 = arith.sitofp %22 : vector<8x128xi32> to vector<8x128xf32>
    %c2_i32 = arith.constant 2 : i32
    %24 = vector.broadcast %c2_i32 : i32 to vector<8x128xi32>
    %25 = arith.cmpi eq, %15, %24 : vector<8x128xi32>
    %26 = arith.extui %25 : vector<8x128xi1> to vector<8x128xi32>
    %27 = arith.sitofp %26 : vector<8x128xi32> to vector<8x128xf32>
    %c3_i32 = arith.constant 3 : i32
    %28 = vector.broadcast %c3_i32 : i32 to vector<8x128xi32>
    %29 = arith.cmpi eq, %15, %28 : vector<8x128xi32>
    %30 = arith.extui %29 : vector<8x128xi1> to vector<8x128xi32>
    %31 = arith.sitofp %30 : vector<8x128xi32> to vector<8x128xf32>
    %cst_16 = arith.constant 0.000000e+00 : f32
    %32 = vector.broadcast %cst_16 : f32 to vector<8x128xf32>
    %cst_17 = arith.constant 0.000000e+00 : f32
    %33 = vector.broadcast %cst_17 : f32 to vector<8x128xf32>
    %cst_18 = arith.constant 0.000000e+00 : f32
    %34 = vector.broadcast %cst_18 : f32 to vector<8x128xf32>
    %35 = arith.mulf %32, %19 : vector<8x128xf32>
    %cst_19 = arith.constant dense<0.000000e+00> : vector<8xf32>
    %36 = vector.multi_reduction <add>, %35, %cst_19 [1] : vector<8x128xf32> to vector<8xf32>
    %37 = vector.shape_cast %36 : vector<8xf32> to vector<8x1xf32>
    %38 = vector.broadcast %37 : vector<8x1xf32> to vector<8x512xf32>
    %39 = arith.mulf %38, %8 : vector<8x512xf32>
    %40 = arith.mulf %32, %23 : vector<8x128xf32>
    %cst_20 = arith.constant dense<0.000000e+00> : vector<8xf32>
    %41 = vector.multi_reduction <add>, %40, %cst_20 [1] : vector<8x128xf32> to vector<8xf32>
    %42 = vector.shape_cast %41 : vector<8xf32> to vector<8x1xf32>
    %43 = vector.broadcast %42 : vector<8x1xf32> to vector<8x512xf32>
    %44 = arith.mulf %43, %10 : vector<8x512xf32>
    %45 = arith.mulf %32, %27 : vector<8x128xf32>
    %cst_21 = arith.constant dense<0.000000e+00> : vector<8xf32>
    %46 = vector.multi_reduction <add>, %45, %cst_21 [1] : vector<8x128xf32> to vector<8xf32>
    %47 = vector.shape_cast %46 : vector<8xf32> to vector<8x1xf32>
    %48 = vector.broadcast %47 : vector<8x1xf32> to vector<8x512xf32>
    %49 = arith.mulf %48, %12 : vector<8x512xf32>
    %50 = arith.mulf %32, %31 : vector<8x128xf32>
    %cst_22 = arith.constant dense<0.000000e+00> : vector<8xf32>
    %51 = vector.multi_reduction <add>, %50, %cst_22 [1] : vector<8x128xf32> to vector<8xf32>
    %52 = vector.shape_cast %51 : vector<8xf32> to vector<8x1xf32>
    %53 = vector.broadcast %52 : vector<8x1xf32> to vector<8x512xf32>
    %54 = arith.mulf %53, %14 : vector<8x512xf32>
    %55 = arith.addf %39, %44 : vector<8x512xf32>
    %56 = arith.addf %49, %54 : vector<8x512xf32>
    %57 = arith.addf %55, %56 : vector<8x512xf32>
    %c0_23 = arith.constant 0 : index
    %c0_24 = arith.constant 0 : index
    %58 = vector.load %arg7[%c0_23, %c0_24] : memref<80x512xf32, #tpu.memory_space<vmem>>, vector<8x512xf32>
    %59 = arith.addf %58, %57 : vector<8x512xf32>
    %60 = vector.extract_strided_slice %59 {offsets = [0, 0], sizes = [8, 128], strides = [1, 1]} : vector<8x512xf32> to vector<8x128xf32>
    %61 = arith.negf %60 : vector<8x128xf32>
    %62 = math.exp %61 : vector<8x128xf32>
    %cst_25 = arith.constant 1.000000e+00 : f32
    %63 = vector.broadcast %cst_25 : f32 to vector<8x128xf32>
    %64 = arith.addf %63, %62 : vector<8x128xf32>
    %65 = arith.divf %63, %64 : vector<8x128xf32>
    %66 = vector.extract_strided_slice %59 {offsets = [0, 128], sizes = [8, 128], strides = [1, 1]} : vector<8x512xf32> to vector<8x128xf32>
    %67 = arith.negf %66 : vector<8x128xf32>
    %68 = math.exp %67 : vector<8x128xf32>
    %cst_26 = arith.constant 1.000000e+00 : f32
    %69 = vector.broadcast %cst_26 : f32 to vector<8x128xf32>
    %70 = arith.addf %69, %68 : vector<8x128xf32>
    %71 = arith.divf %69, %70 : vector<8x128xf32>
    %72 = vector.extract_strided_slice %59 {offsets = [0, 256], sizes = [8, 128], strides = [1, 1]} : vector<8x512xf32> to vector<8x128xf32>
    %73 = math.tanh %72 : vector<8x128xf32>
    %74 = vector.extract_strided_slice %59 {offsets = [0, 384], sizes = [8, 128], strides = [1, 1]} : vector<8x512xf32> to vector<8x128xf32>
    %75 = arith.negf %74 : vector<8x128xf32>
    %76 = math.exp %75 : vector<8x128xf32>
    %cst_27 = arith.constant 1.000000e+00 : f32
    %77 = vector.broadcast %cst_27 : f32 to vector<8x128xf32>
    %78 = arith.addf %77, %76 : vector<8x128xf32>
    %79 = arith.divf %77, %78 : vector<8x128xf32>
    %80 = arith.mulf %71, %33 : vector<8x128xf32>
    %81 = arith.mulf %65, %73 : vector<8x128xf32>
    %82 = arith.addf %80, %81 : vector<8x128xf32>
    %83 = math.tanh %82 : vector<8x128xf32>
    %84 = arith.mulf %79, %83 : vector<8x128xf32>
    %c0_28 = arith.constant 0 : index
    %c0_29 = arith.constant 0 : index
    %c0_30 = arith.constant 0 : index
    %85 = vector.load %arg4[%c0_28, %c0_29, %c0_30] : memref<10x8x128xf32, #tpu.memory_space<vmem>>, vector<1x8x128xf32>
    %86 = vector.shape_cast %85 : vector<1x8x128xf32> to vector<8x128xf32>
    %87 = arith.mulf %84, %86 : vector<8x128xf32>
    %88 = arith.addf %34, %87 : vector<8x128xf32>
    %89 = arith.mulf %84, %19 : vector<8x128xf32>
    %cst_31 = arith.constant dense<0.000000e+00> : vector<8xf32>
    %90 = vector.multi_reduction <add>, %89, %cst_31 [1] : vector<8x128xf32> to vector<8xf32>
    %91 = vector.shape_cast %90 : vector<8xf32> to vector<8x1xf32>
    %92 = vector.broadcast %91 : vector<8x1xf32> to vector<8x512xf32>
    %93 = arith.mulf %92, %8 : vector<8x512xf32>
    %94 = arith.mulf %84, %23 : vector<8x128xf32>
    %cst_32 = arith.constant dense<0.000000e+00> : vector<8xf32>
    %95 = vector.multi_reduction <add>, %94, %cst_32 [1] : vector<8x128xf32> to vector<8xf32>
    %96 = vector.shape_cast %95 : vector<8xf32> to vector<8x1xf32>
    %97 = vector.broadcast %96 : vector<8x1xf32> to vector<8x512xf32>
    %98 = arith.mulf %97, %10 : vector<8x512xf32>
    %99 = arith.mulf %84, %27 : vector<8x128xf32>
    %cst_33 = arith.constant dense<0.000000e+00> : vector<8xf32>
    %100 = vector.multi_reduction <add>, %99, %cst_33 [1] : vector<8x128xf32> to vector<8xf32>
    %101 = vector.shape_cast %100 : vector<8xf32> to vector<8x1xf32>
    %102 = vector.broadcast %101 : vector<8x1xf32> to vector<8x512xf32>
    %103 = arith.mulf %102, %12 : vector<8x512xf32>
    %104 = arith.mulf %84, %31 : vector<8x128xf32>
    %cst_34 = arith.constant dense<0.000000e+00> : vector<8xf32>
    %105 = vector.multi_reduction <add>, %104, %cst_34 [1] : vector<8x128xf32> to vector<8xf32>
    %106 = vector.shape_cast %105 : vector<8xf32> to vector<8x1xf32>
    %107 = vector.broadcast %106 : vector<8x1xf32> to vector<8x512xf32>
    %108 = arith.mulf %107, %14 : vector<8x512xf32>
    %109 = arith.addf %93, %98 : vector<8x512xf32>
    %110 = arith.addf %103, %108 : vector<8x512xf32>
    %111 = arith.addf %109, %110 : vector<8x512xf32>
    %c8 = arith.constant 8 : index
    %c0_35 = arith.constant 0 : index
    %112 = vector.load %arg7[%c8, %c0_35] : memref<80x512xf32, #tpu.memory_space<vmem>>, vector<8x512xf32>
    %113 = arith.addf %112, %111 : vector<8x512xf32>
    %114 = vector.extract_strided_slice %113 {offsets = [0, 0], sizes = [8, 128], strides = [1, 1]} : vector<8x512xf32> to vector<8x128xf32>
    %115 = arith.negf %114 : vector<8x128xf32>
    %116 = math.exp %115 : vector<8x128xf32>
    %cst_36 = arith.constant 1.000000e+00 : f32
    %117 = vector.broadcast %cst_36 : f32 to vector<8x128xf32>
    %118 = arith.addf %117, %116 : vector<8x128xf32>
    %119 = arith.divf %117, %118 : vector<8x128xf32>
    %120 = vector.extract_strided_slice %113 {offsets = [0, 128], sizes = [8, 128], strides = [1, 1]} : vector<8x512xf32> to vector<8x128xf32>
    %121 = arith.negf %120 : vector<8x128xf32>
    %122 = math.exp %121 : vector<8x128xf32>
    %cst_37 = arith.constant 1.000000e+00 : f32
    %123 = vector.broadcast %cst_37 : f32 to vector<8x128xf32>
    %124 = arith.addf %123, %122 : vector<8x128xf32>
    %125 = arith.divf %123, %124 : vector<8x128xf32>
    %126 = vector.extract_strided_slice %113 {offsets = [0, 256], sizes = [8, 128], strides = [1, 1]} : vector<8x512xf32> to vector<8x128xf32>
    %127 = math.tanh %126 : vector<8x128xf32>
    %128 = vector.extract_strided_slice %113 {offsets = [0, 384], sizes = [8, 128], strides = [1, 1]} : vector<8x512xf32> to vector<8x128xf32>
    %129 = arith.negf %128 : vector<8x128xf32>
    %130 = math.exp %129 : vector<8x128xf32>
    %cst_38 = arith.constant 1.000000e+00 : f32
    %131 = vector.broadcast %cst_38 : f32 to vector<8x128xf32>
    %132 = arith.addf %131, %130 : vector<8x128xf32>
    %133 = arith.divf %131, %132 : vector<8x128xf32>
    %134 = arith.mulf %125, %82 : vector<8x128xf32>
    %135 = arith.mulf %119, %127 : vector<8x128xf32>
    %136 = arith.addf %134, %135 : vector<8x128xf32>
    %137 = math.tanh %136 : vector<8x128xf32>
    %138 = arith.mulf %133, %137 : vector<8x128xf32>
    %c1_39 = arith.constant 1 : index
    %c0_40 = arith.constant 0 : index
    %c0_41 = arith.constant 0 : index
    %139 = vector.load %arg4[%c1_39, %c0_40, %c0_41] : memref<10x8x128xf32, #tpu.memory_space<vmem>>, vector<1x8x128xf32>
    %140 = vector.shape_cast %139 : vector<1x8x128xf32> to vector<8x128xf32>
    %141 = arith.mulf %138, %140 : vector<8x128xf32>
    %142 = arith.addf %88, %141 : vector<8x128xf32>
    %143 = arith.mulf %138, %19 : vector<8x128xf32>
    %cst_42 = arith.constant dense<0.000000e+00> : vector<8xf32>
    %144 = vector.multi_reduction <add>, %143, %cst_42 [1] : vector<8x128xf32> to vector<8xf32>
    %145 = vector.shape_cast %144 : vector<8xf32> to vector<8x1xf32>
    %146 = vector.broadcast %145 : vector<8x1xf32> to vector<8x512xf32>
    %147 = arith.mulf %146, %8 : vector<8x512xf32>
    %148 = arith.mulf %138, %23 : vector<8x128xf32>
    %cst_43 = arith.constant dense<0.000000e+00> : vector<8xf32>
    %149 = vector.multi_reduction <add>, %148, %cst_43 [1] : vector<8x128xf32> to vector<8xf32>
    %150 = vector.shape_cast %149 : vector<8xf32> to vector<8x1xf32>
    %151 = vector.broadcast %150 : vector<8x1xf32> to vector<8x512xf32>
    %152 = arith.mulf %151, %10 : vector<8x512xf32>
    %153 = arith.mulf %138, %27 : vector<8x128xf32>
    %cst_44 = arith.constant dense<0.000000e+00> : vector<8xf32>
    %154 = vector.multi_reduction <add>, %153, %cst_44 [1] : vector<8x128xf32> to vector<8xf32>
    %155 = vector.shape_cast %154 : vector<8xf32> to vector<8x1xf32>
    %156 = vector.broadcast %155 : vector<8x1xf32> to vector<8x512xf32>
    %157 = arith.mulf %156, %12 : vector<8x512xf32>
    %158 = arith.mulf %138, %31 : vector<8x128xf32>
    %cst_45 = arith.constant dense<0.000000e+00> : vector<8xf32>
    %159 = vector.multi_reduction <add>, %158, %cst_45 [1] : vector<8x128xf32> to vector<8xf32>
    %160 = vector.shape_cast %159 : vector<8xf32> to vector<8x1xf32>
    %161 = vector.broadcast %160 : vector<8x1xf32> to vector<8x512xf32>
    %162 = arith.mulf %161, %14 : vector<8x512xf32>
    %163 = arith.addf %147, %152 : vector<8x512xf32>
    %164 = arith.addf %157, %162 : vector<8x512xf32>
    %165 = arith.addf %163, %164 : vector<8x512xf32>
    %c16 = arith.constant 16 : index
    %c0_46 = arith.constant 0 : index
    %166 = vector.load %arg7[%c16, %c0_46] : memref<80x512xf32, #tpu.memory_space<vmem>>, vector<8x512xf32>
    %167 = arith.addf %166, %165 : vector<8x512xf32>
    %168 = vector.extract_strided_slice %167 {offsets = [0, 0], sizes = [8, 128], strides = [1, 1]} : vector<8x512xf32> to vector<8x128xf32>
    %169 = arith.negf %168 : vector<8x128xf32>
    %170 = math.exp %169 : vector<8x128xf32>
    %cst_47 = arith.constant 1.000000e+00 : f32
    %171 = vector.broadcast %cst_47 : f32 to vector<8x128xf32>
    %172 = arith.addf %171, %170 : vector<8x128xf32>
    %173 = arith.divf %171, %172 : vector<8x128xf32>
    %174 = vector.extract_strided_slice %167 {offsets = [0, 128], sizes = [8, 128], strides = [1, 1]} : vector<8x512xf32> to vector<8x128xf32>
    %175 = arith.negf %174 : vector<8x128xf32>
    %176 = math.exp %175 : vector<8x128xf32>
    %cst_48 = arith.constant 1.000000e+00 : f32
    %177 = vector.broadcast %cst_48 : f32 to vector<8x128xf32>
    %178 = arith.addf %177, %176 : vector<8x128xf32>
    %179 = arith.divf %177, %178 : vector<8x128xf32>
    %180 = vector.extract_strided_slice %167 {offsets = [0, 256], sizes = [8, 128], strides = [1, 1]} : vector<8x512xf32> to vector<8x128xf32>
    %181 = math.tanh %180 : vector<8x128xf32>
    %182 = vector.extract_strided_slice %167 {offsets = [0, 384], sizes = [8, 128], strides = [1, 1]} : vector<8x512xf32> to vector<8x128xf32>
    %183 = arith.negf %182 : vector<8x128xf32>
    %184 = math.exp %183 : vector<8x128xf32>
    %cst_49 = arith.constant 1.000000e+00 : f32
    %185 = vector.broadcast %cst_49 : f32 to vector<8x128xf32>
    %186 = arith.addf %185, %184 : vector<8x128xf32>
    %187 = arith.divf %185, %186 : vector<8x128xf32>
    %188 = arith.mulf %179, %136 : vector<8x128xf32>
    %189 = arith.mulf %173, %181 : vector<8x128xf32>
    %190 = arith.addf %188, %189 : vector<8x128xf32>
    %191 = math.tanh %190 : vector<8x128xf32>
    %192 = arith.mulf %187, %191 : vector<8x128xf32>
    %c2_50 = arith.constant 2 : index
    %c0_51 = arith.constant 0 : index
    %c0_52 = arith.constant 0 : index
    %193 = vector.load %arg4[%c2_50, %c0_51, %c0_52] : memref<10x8x128xf32, #tpu.memory_space<vmem>>, vector<1x8x128xf32>
    %194 = vector.shape_cast %193 : vector<1x8x128xf32> to vector<8x128xf32>
    %195 = arith.mulf %192, %194 : vector<8x128xf32>
    %196 = arith.addf %142, %195 : vector<8x128xf32>
    %197 = arith.mulf %192, %19 : vector<8x128xf32>
    %cst_53 = arith.constant dense<0.000000e+00> : vector<8xf32>
    %198 = vector.multi_reduction <add>, %197, %cst_53 [1] : vector<8x128xf32> to vector<8xf32>
    %199 = vector.shape_cast %198 : vector<8xf32> to vector<8x1xf32>
    %200 = vector.broadcast %199 : vector<8x1xf32> to vector<8x512xf32>
    %201 = arith.mulf %200, %8 : vector<8x512xf32>
    %202 = arith.mulf %192, %23 : vector<8x128xf32>
    %cst_54 = arith.constant dense<0.000000e+00> : vector<8xf32>
    %203 = vector.multi_reduction <add>, %202, %cst_54 [1] : vector<8x128xf32> to vector<8xf32>
    %204 = vector.shape_cast %203 : vector<8xf32> to vector<8x1xf32>
    %205 = vector.broadcast %204 : vector<8x1xf32> to vector<8x512xf32>
    %206 = arith.mulf %205, %10 : vector<8x512xf32>
    %207 = arith.mulf %192, %27 : vector<8x128xf32>
    %cst_55 = arith.constant dense<0.000000e+00> : vector<8xf32>
    %208 = vector.multi_reduction <add>, %207, %cst_55 [1] : vector<8x128xf32> to vector<8xf32>
    %209 = vector.shape_cast %208 : vector<8xf32> to vector<8x1xf32>
    %210 = vector.broadcast %209 : vector<8x1xf32> to vector<8x512xf32>
    %211 = arith.mulf %210, %12 : vector<8x512xf32>
    %212 = arith.mulf %192, %31 : vector<8x128xf32>
    %cst_56 = arith.constant dense<0.000000e+00> : vector<8xf32>
    %213 = vector.multi_reduction <add>, %212, %cst_56 [1] : vector<8x128xf32> to vector<8xf32>
    %214 = vector.shape_cast %213 : vector<8xf32> to vector<8x1xf32>
    %215 = vector.broadcast %214 : vector<8x1xf32> to vector<8x512xf32>
    %216 = arith.mulf %215, %14 : vector<8x512xf32>
    %217 = arith.addf %201, %206 : vector<8x512xf32>
    %218 = arith.addf %211, %216 : vector<8x512xf32>
    %219 = arith.addf %217, %218 : vector<8x512xf32>
    %c24 = arith.constant 24 : index
    %c0_57 = arith.constant 0 : index
    %220 = vector.load %arg7[%c24, %c0_57] : memref<80x512xf32, #tpu.memory_space<vmem>>, vector<8x512xf32>
    %221 = arith.addf %220, %219 : vector<8x512xf32>
    %222 = vector.extract_strided_slice %221 {offsets = [0, 0], sizes = [8, 128], strides = [1, 1]} : vector<8x512xf32> to vector<8x128xf32>
    %223 = arith.negf %222 : vector<8x128xf32>
    %224 = math.exp %223 : vector<8x128xf32>
    %cst_58 = arith.constant 1.000000e+00 : f32
    %225 = vector.broadcast %cst_58 : f32 to vector<8x128xf32>
    %226 = arith.addf %225, %224 : vector<8x128xf32>
    %227 = arith.divf %225, %226 : vector<8x128xf32>
    %228 = vector.extract_strided_slice %221 {offsets = [0, 128], sizes = [8, 128], strides = [1, 1]} : vector<8x512xf32> to vector<8x128xf32>
    %229 = arith.negf %228 : vector<8x128xf32>
    %230 = math.exp %229 : vector<8x128xf32>
    %cst_59 = arith.constant 1.000000e+00 : f32
    %231 = vector.broadcast %cst_59 : f32 to vector<8x128xf32>
    %232 = arith.addf %231, %230 : vector<8x128xf32>
    %233 = arith.divf %231, %232 : vector<8x128xf32>
    %234 = vector.extract_strided_slice %221 {offsets = [0, 256], sizes = [8, 128], strides = [1, 1]} : vector<8x512xf32> to vector<8x128xf32>
    %235 = math.tanh %234 : vector<8x128xf32>
    %236 = vector.extract_strided_slice %221 {offsets = [0, 384], sizes = [8, 128], strides = [1, 1]} : vector<8x512xf32> to vector<8x128xf32>
    %237 = arith.negf %236 : vector<8x128xf32>
    %238 = math.exp %237 : vector<8x128xf32>
    %cst_60 = arith.constant 1.000000e+00 : f32
    %239 = vector.broadcast %cst_60 : f32 to vector<8x128xf32>
    %240 = arith.addf %239, %238 : vector<8x128xf32>
    %241 = arith.divf %239, %240 : vector<8x128xf32>
    %242 = arith.mulf %233, %190 : vector<8x128xf32>
    %243 = arith.mulf %227, %235 : vector<8x128xf32>
    %244 = arith.addf %242, %243 : vector<8x128xf32>
    %245 = math.tanh %244 : vector<8x128xf32>
    %246 = arith.mulf %241, %245 : vector<8x128xf32>
    %c3_61 = arith.constant 3 : index
    %c0_62 = arith.constant 0 : index
    %c0_63 = arith.constant 0 : index
    %247 = vector.load %arg4[%c3_61, %c0_62, %c0_63] : memref<10x8x128xf32, #tpu.memory_space<vmem>>, vector<1x8x128xf32>
    %248 = vector.shape_cast %247 : vector<1x8x128xf32> to vector<8x128xf32>
    %249 = arith.mulf %246, %248 : vector<8x128xf32>
    %250 = arith.addf %196, %249 : vector<8x128xf32>
    %251 = arith.mulf %246, %19 : vector<8x128xf32>
    %cst_64 = arith.constant dense<0.000000e+00> : vector<8xf32>
    %252 = vector.multi_reduction <add>, %251, %cst_64 [1] : vector<8x128xf32> to vector<8xf32>
    %253 = vector.shape_cast %252 : vector<8xf32> to vector<8x1xf32>
    %254 = vector.broadcast %253 : vector<8x1xf32> to vector<8x512xf32>
    %255 = arith.mulf %254, %8 : vector<8x512xf32>
    %256 = arith.mulf %246, %23 : vector<8x128xf32>
    %cst_65 = arith.constant dense<0.000000e+00> : vector<8xf32>
    %257 = vector.multi_reduction <add>, %256, %cst_65 [1] : vector<8x128xf32> to vector<8xf32>
    %258 = vector.shape_cast %257 : vector<8xf32> to vector<8x1xf32>
    %259 = vector.broadcast %258 : vector<8x1xf32> to vector<8x512xf32>
    %260 = arith.mulf %259, %10 : vector<8x512xf32>
    %261 = arith.mulf %246, %27 : vector<8x128xf32>
    %cst_66 = arith.constant dense<0.000000e+00> : vector<8xf32>
    %262 = vector.multi_reduction <add>, %261, %cst_66 [1] : vector<8x128xf32> to vector<8xf32>
    %263 = vector.shape_cast %262 : vector<8xf32> to vector<8x1xf32>
    %264 = vector.broadcast %263 : vector<8x1xf32> to vector<8x512xf32>
    %265 = arith.mulf %264, %12 : vector<8x512xf32>
    %266 = arith.mulf %246, %31 : vector<8x128xf32>
    %cst_67 = arith.constant dense<0.000000e+00> : vector<8xf32>
    %267 = vector.multi_reduction <add>, %266, %cst_67 [1] : vector<8x128xf32> to vector<8xf32>
    %268 = vector.shape_cast %267 : vector<8xf32> to vector<8x1xf32>
    %269 = vector.broadcast %268 : vector<8x1xf32> to vector<8x512xf32>
    %270 = arith.mulf %269, %14 : vector<8x512xf32>
    %271 = arith.addf %255, %260 : vector<8x512xf32>
    %272 = arith.addf %265, %270 : vector<8x512xf32>
    %273 = arith.addf %271, %272 : vector<8x512xf32>
    %c32 = arith.constant 32 : index
    %c0_68 = arith.constant 0 : index
    %274 = vector.load %arg7[%c32, %c0_68] : memref<80x512xf32, #tpu.memory_space<vmem>>, vector<8x512xf32>
    %275 = arith.addf %274, %273 : vector<8x512xf32>
    %276 = vector.extract_strided_slice %275 {offsets = [0, 0], sizes = [8, 128], strides = [1, 1]} : vector<8x512xf32> to vector<8x128xf32>
    %277 = arith.negf %276 : vector<8x128xf32>
    %278 = math.exp %277 : vector<8x128xf32>
    %cst_69 = arith.constant 1.000000e+00 : f32
    %279 = vector.broadcast %cst_69 : f32 to vector<8x128xf32>
    %280 = arith.addf %279, %278 : vector<8x128xf32>
    %281 = arith.divf %279, %280 : vector<8x128xf32>
    %282 = vector.extract_strided_slice %275 {offsets = [0, 128], sizes = [8, 128], strides = [1, 1]} : vector<8x512xf32> to vector<8x128xf32>
    %283 = arith.negf %282 : vector<8x128xf32>
    %284 = math.exp %283 : vector<8x128xf32>
    %cst_70 = arith.constant 1.000000e+00 : f32
    %285 = vector.broadcast %cst_70 : f32 to vector<8x128xf32>
    %286 = arith.addf %285, %284 : vector<8x128xf32>
    %287 = arith.divf %285, %286 : vector<8x128xf32>
    %288 = vector.extract_strided_slice %275 {offsets = [0, 256], sizes = [8, 128], strides = [1, 1]} : vector<8x512xf32> to vector<8x128xf32>
    %289 = math.tanh %288 : vector<8x128xf32>
    %290 = vector.extract_strided_slice %275 {offsets = [0, 384], sizes = [8, 128], strides = [1, 1]} : vector<8x512xf32> to vector<8x128xf32>
    %291 = arith.negf %290 : vector<8x128xf32>
    %292 = math.exp %291 : vector<8x128xf32>
    %cst_71 = arith.constant 1.000000e+00 : f32
    %293 = vector.broadcast %cst_71 : f32 to vector<8x128xf32>
    %294 = arith.addf %293, %292 : vector<8x128xf32>
    %295 = arith.divf %293, %294 : vector<8x128xf32>
    %296 = arith.mulf %287, %244 : vector<8x128xf32>
    %297 = arith.mulf %281, %289 : vector<8x128xf32>
    %298 = arith.addf %296, %297 : vector<8x128xf32>
    %299 = math.tanh %298 : vector<8x128xf32>
    %300 = arith.mulf %295, %299 : vector<8x128xf32>
    %c4 = arith.constant 4 : index
    %c0_72 = arith.constant 0 : index
    %c0_73 = arith.constant 0 : index
    %301 = vector.load %arg4[%c4, %c0_72, %c0_73] : memref<10x8x128xf32, #tpu.memory_space<vmem>>, vector<1x8x128xf32>
    %302 = vector.shape_cast %301 : vector<1x8x128xf32> to vector<8x128xf32>
    %303 = arith.mulf %300, %302 : vector<8x128xf32>
    %304 = arith.addf %250, %303 : vector<8x128xf32>
    %305 = arith.mulf %300, %19 : vector<8x128xf32>
    %cst_74 = arith.constant dense<0.000000e+00> : vector<8xf32>
    %306 = vector.multi_reduction <add>, %305, %cst_74 [1] : vector<8x128xf32> to vector<8xf32>
    %307 = vector.shape_cast %306 : vector<8xf32> to vector<8x1xf32>
    %308 = vector.broadcast %307 : vector<8x1xf32> to vector<8x512xf32>
    %309 = arith.mulf %308, %8 : vector<8x512xf32>
    %310 = arith.mulf %300, %23 : vector<8x128xf32>
    %cst_75 = arith.constant dense<0.000000e+00> : vector<8xf32>
    %311 = vector.multi_reduction <add>, %310, %cst_75 [1] : vector<8x128xf32> to vector<8xf32>
    %312 = vector.shape_cast %311 : vector<8xf32> to vector<8x1xf32>
    %313 = vector.broadcast %312 : vector<8x1xf32> to vector<8x512xf32>
    %314 = arith.mulf %313, %10 : vector<8x512xf32>
    %315 = arith.mulf %300, %27 : vector<8x128xf32>
    %cst_76 = arith.constant dense<0.000000e+00> : vector<8xf32>
    %316 = vector.multi_reduction <add>, %315, %cst_76 [1] : vector<8x128xf32> to vector<8xf32>
    %317 = vector.shape_cast %316 : vector<8xf32> to vector<8x1xf32>
    %318 = vector.broadcast %317 : vector<8x1xf32> to vector<8x512xf32>
    %319 = arith.mulf %318, %12 : vector<8x512xf32>
    %320 = arith.mulf %300, %31 : vector<8x128xf32>
    %cst_77 = arith.constant dense<0.000000e+00> : vector<8xf32>
    %321 = vector.multi_reduction <add>, %320, %cst_77 [1] : vector<8x128xf32> to vector<8xf32>
    %322 = vector.shape_cast %321 : vector<8xf32> to vector<8x1xf32>
    %323 = vector.broadcast %322 : vector<8x1xf32> to vector<8x512xf32>
    %324 = arith.mulf %323, %14 : vector<8x512xf32>
    %325 = arith.addf %309, %314 : vector<8x512xf32>
    %326 = arith.addf %319, %324 : vector<8x512xf32>
    %327 = arith.addf %325, %326 : vector<8x512xf32>
    %c40 = arith.constant 40 : index
    %c0_78 = arith.constant 0 : index
    %328 = vector.load %arg7[%c40, %c0_78] : memref<80x512xf32, #tpu.memory_space<vmem>>, vector<8x512xf32>
    %329 = arith.addf %328, %327 : vector<8x512xf32>
    %330 = vector.extract_strided_slice %329 {offsets = [0, 0], sizes = [8, 128], strides = [1, 1]} : vector<8x512xf32> to vector<8x128xf32>
    %331 = arith.negf %330 : vector<8x128xf32>
    %332 = math.exp %331 : vector<8x128xf32>
    %cst_79 = arith.constant 1.000000e+00 : f32
    %333 = vector.broadcast %cst_79 : f32 to vector<8x128xf32>
    %334 = arith.addf %333, %332 : vector<8x128xf32>
    %335 = arith.divf %333, %334 : vector<8x128xf32>
    %336 = vector.extract_strided_slice %329 {offsets = [0, 128], sizes = [8, 128], strides = [1, 1]} : vector<8x512xf32> to vector<8x128xf32>
    %337 = arith.negf %336 : vector<8x128xf32>
    %338 = math.exp %337 : vector<8x128xf32>
    %cst_80 = arith.constant 1.000000e+00 : f32
    %339 = vector.broadcast %cst_80 : f32 to vector<8x128xf32>
    %340 = arith.addf %339, %338 : vector<8x128xf32>
    %341 = arith.divf %339, %340 : vector<8x128xf32>
    %342 = vector.extract_strided_slice %329 {offsets = [0, 256], sizes = [8, 128], strides = [1, 1]} : vector<8x512xf32> to vector<8x128xf32>
    %343 = math.tanh %342 : vector<8x128xf32>
    %344 = vector.extract_strided_slice %329 {offsets = [0, 384], sizes = [8, 128], strides = [1, 1]} : vector<8x512xf32> to vector<8x128xf32>
    %345 = arith.negf %344 : vector<8x128xf32>
    %346 = math.exp %345 : vector<8x128xf32>
    %cst_81 = arith.constant 1.000000e+00 : f32
    %347 = vector.broadcast %cst_81 : f32 to vector<8x128xf32>
    %348 = arith.addf %347, %346 : vector<8x128xf32>
    %349 = arith.divf %347, %348 : vector<8x128xf32>
    %350 = arith.mulf %341, %298 : vector<8x128xf32>
    %351 = arith.mulf %335, %343 : vector<8x128xf32>
    %352 = arith.addf %350, %351 : vector<8x128xf32>
    %353 = math.tanh %352 : vector<8x128xf32>
    %354 = arith.mulf %349, %353 : vector<8x128xf32>
    %c5 = arith.constant 5 : index
    %c0_82 = arith.constant 0 : index
    %c0_83 = arith.constant 0 : index
    %355 = vector.load %arg4[%c5, %c0_82, %c0_83] : memref<10x8x128xf32, #tpu.memory_space<vmem>>, vector<1x8x128xf32>
    %356 = vector.shape_cast %355 : vector<1x8x128xf32> to vector<8x128xf32>
    %357 = arith.mulf %354, %356 : vector<8x128xf32>
    %358 = arith.addf %304, %357 : vector<8x128xf32>
    %359 = arith.mulf %354, %19 : vector<8x128xf32>
    %cst_84 = arith.constant dense<0.000000e+00> : vector<8xf32>
    %360 = vector.multi_reduction <add>, %359, %cst_84 [1] : vector<8x128xf32> to vector<8xf32>
    %361 = vector.shape_cast %360 : vector<8xf32> to vector<8x1xf32>
    %362 = vector.broadcast %361 : vector<8x1xf32> to vector<8x512xf32>
    %363 = arith.mulf %362, %8 : vector<8x512xf32>
    %364 = arith.mulf %354, %23 : vector<8x128xf32>
    %cst_85 = arith.constant dense<0.000000e+00> : vector<8xf32>
    %365 = vector.multi_reduction <add>, %364, %cst_85 [1] : vector<8x128xf32> to vector<8xf32>
    %366 = vector.shape_cast %365 : vector<8xf32> to vector<8x1xf32>
    %367 = vector.broadcast %366 : vector<8x1xf32> to vector<8x512xf32>
    %368 = arith.mulf %367, %10 : vector<8x512xf32>
    %369 = arith.mulf %354, %27 : vector<8x128xf32>
    %cst_86 = arith.constant dense<0.000000e+00> : vector<8xf32>
    %370 = vector.multi_reduction <add>, %369, %cst_86 [1] : vector<8x128xf32> to vector<8xf32>
    %371 = vector.shape_cast %370 : vector<8xf32> to vector<8x1xf32>
    %372 = vector.broadcast %371 : vector<8x1xf32> to vector<8x512xf32>
    %373 = arith.mulf %372, %12 : vector<8x512xf32>
    %374 = arith.mulf %354, %31 : vector<8x128xf32>
    %cst_87 = arith.constant dense<0.000000e+00> : vector<8xf32>
    %375 = vector.multi_reduction <add>, %374, %cst_87 [1] : vector<8x128xf32> to vector<8xf32>
    %376 = vector.shape_cast %375 : vector<8xf32> to vector<8x1xf32>
    %377 = vector.broadcast %376 : vector<8x1xf32> to vector<8x512xf32>
    %378 = arith.mulf %377, %14 : vector<8x512xf32>
    %379 = arith.addf %363, %368 : vector<8x512xf32>
    %380 = arith.addf %373, %378 : vector<8x512xf32>
    %381 = arith.addf %379, %380 : vector<8x512xf32>
    %c48 = arith.constant 48 : index
    %c0_88 = arith.constant 0 : index
    %382 = vector.load %arg7[%c48, %c0_88] : memref<80x512xf32, #tpu.memory_space<vmem>>, vector<8x512xf32>
    %383 = arith.addf %382, %381 : vector<8x512xf32>
    %384 = vector.extract_strided_slice %383 {offsets = [0, 0], sizes = [8, 128], strides = [1, 1]} : vector<8x512xf32> to vector<8x128xf32>
    %385 = arith.negf %384 : vector<8x128xf32>
    %386 = math.exp %385 : vector<8x128xf32>
    %cst_89 = arith.constant 1.000000e+00 : f32
    %387 = vector.broadcast %cst_89 : f32 to vector<8x128xf32>
    %388 = arith.addf %387, %386 : vector<8x128xf32>
    %389 = arith.divf %387, %388 : vector<8x128xf32>
    %390 = vector.extract_strided_slice %383 {offsets = [0, 128], sizes = [8, 128], strides = [1, 1]} : vector<8x512xf32> to vector<8x128xf32>
    %391 = arith.negf %390 : vector<8x128xf32>
    %392 = math.exp %391 : vector<8x128xf32>
    %cst_90 = arith.constant 1.000000e+00 : f32
    %393 = vector.broadcast %cst_90 : f32 to vector<8x128xf32>
    %394 = arith.addf %393, %392 : vector<8x128xf32>
    %395 = arith.divf %393, %394 : vector<8x128xf32>
    %396 = vector.extract_strided_slice %383 {offsets = [0, 256], sizes = [8, 128], strides = [1, 1]} : vector<8x512xf32> to vector<8x128xf32>
    %397 = math.tanh %396 : vector<8x128xf32>
    %398 = vector.extract_strided_slice %383 {offsets = [0, 384], sizes = [8, 128], strides = [1, 1]} : vector<8x512xf32> to vector<8x128xf32>
    %399 = arith.negf %398 : vector<8x128xf32>
    %400 = math.exp %399 : vector<8x128xf32>
    %cst_91 = arith.constant 1.000000e+00 : f32
    %401 = vector.broadcast %cst_91 : f32 to vector<8x128xf32>
    %402 = arith.addf %401, %400 : vector<8x128xf32>
    %403 = arith.divf %401, %402 : vector<8x128xf32>
    %404 = arith.mulf %395, %352 : vector<8x128xf32>
    %405 = arith.mulf %389, %397 : vector<8x128xf32>
    %406 = arith.addf %404, %405 : vector<8x128xf32>
    %407 = math.tanh %406 : vector<8x128xf32>
    %408 = arith.mulf %403, %407 : vector<8x128xf32>
    %c6 = arith.constant 6 : index
    %c0_92 = arith.constant 0 : index
    %c0_93 = arith.constant 0 : index
    %409 = vector.load %arg4[%c6, %c0_92, %c0_93] : memref<10x8x128xf32, #tpu.memory_space<vmem>>, vector<1x8x128xf32>
    %410 = vector.shape_cast %409 : vector<1x8x128xf32> to vector<8x128xf32>
    %411 = arith.mulf %408, %410 : vector<8x128xf32>
    %412 = arith.addf %358, %411 : vector<8x128xf32>
    %413 = arith.mulf %408, %19 : vector<8x128xf32>
    %cst_94 = arith.constant dense<0.000000e+00> : vector<8xf32>
    %414 = vector.multi_reduction <add>, %413, %cst_94 [1] : vector<8x128xf32> to vector<8xf32>
    %415 = vector.shape_cast %414 : vector<8xf32> to vector<8x1xf32>
    %416 = vector.broadcast %415 : vector<8x1xf32> to vector<8x512xf32>
    %417 = arith.mulf %416, %8 : vector<8x512xf32>
    %418 = arith.mulf %408, %23 : vector<8x128xf32>
    %cst_95 = arith.constant dense<0.000000e+00> : vector<8xf32>
    %419 = vector.multi_reduction <add>, %418, %cst_95 [1] : vector<8x128xf32> to vector<8xf32>
    %420 = vector.shape_cast %419 : vector<8xf32> to vector<8x1xf32>
    %421 = vector.broadcast %420 : vector<8x1xf32> to vector<8x512xf32>
    %422 = arith.mulf %421, %10 : vector<8x512xf32>
    %423 = arith.mulf %408, %27 : vector<8x128xf32>
    %cst_96 = arith.constant dense<0.000000e+00> : vector<8xf32>
    %424 = vector.multi_reduction <add>, %423, %cst_96 [1] : vector<8x128xf32> to vector<8xf32>
    %425 = vector.shape_cast %424 : vector<8xf32> to vector<8x1xf32>
    %426 = vector.broadcast %425 : vector<8x1xf32> to vector<8x512xf32>
    %427 = arith.mulf %426, %12 : vector<8x512xf32>
    %428 = arith.mulf %408, %31 : vector<8x128xf32>
    %cst_97 = arith.constant dense<0.000000e+00> : vector<8xf32>
    %429 = vector.multi_reduction <add>, %428, %cst_97 [1] : vector<8x128xf32> to vector<8xf32>
    %430 = vector.shape_cast %429 : vector<8xf32> to vector<8x1xf32>
    %431 = vector.broadcast %430 : vector<8x1xf32> to vector<8x512xf32>
    %432 = arith.mulf %431, %14 : vector<8x512xf32>
    %433 = arith.addf %417, %422 : vector<8x512xf32>
    %434 = arith.addf %427, %432 : vector<8x512xf32>
    %435 = arith.addf %433, %434 : vector<8x512xf32>
    %c56 = arith.constant 56 : index
    %c0_98 = arith.constant 0 : index
    %436 = vector.load %arg7[%c56, %c0_98] : memref<80x512xf32, #tpu.memory_space<vmem>>, vector<8x512xf32>
    %437 = arith.addf %436, %435 : vector<8x512xf32>
    %438 = vector.extract_strided_slice %437 {offsets = [0, 0], sizes = [8, 128], strides = [1, 1]} : vector<8x512xf32> to vector<8x128xf32>
    %439 = arith.negf %438 : vector<8x128xf32>
    %440 = math.exp %439 : vector<8x128xf32>
    %cst_99 = arith.constant 1.000000e+00 : f32
    %441 = vector.broadcast %cst_99 : f32 to vector<8x128xf32>
    %442 = arith.addf %441, %440 : vector<8x128xf32>
    %443 = arith.divf %441, %442 : vector<8x128xf32>
    %444 = vector.extract_strided_slice %437 {offsets = [0, 128], sizes = [8, 128], strides = [1, 1]} : vector<8x512xf32> to vector<8x128xf32>
    %445 = arith.negf %444 : vector<8x128xf32>
    %446 = math.exp %445 : vector<8x128xf32>
    %cst_100 = arith.constant 1.000000e+00 : f32
    %447 = vector.broadcast %cst_100 : f32 to vector<8x128xf32>
    %448 = arith.addf %447, %446 : vector<8x128xf32>
    %449 = arith.divf %447, %448 : vector<8x128xf32>
    %450 = vector.extract_strided_slice %437 {offsets = [0, 256], sizes = [8, 128], strides = [1, 1]} : vector<8x512xf32> to vector<8x128xf32>
    %451 = math.tanh %450 : vector<8x128xf32>
    %452 = vector.extract_strided_slice %437 {offsets = [0, 384], sizes = [8, 128], strides = [1, 1]} : vector<8x512xf32> to vector<8x128xf32>
    %453 = arith.negf %452 : vector<8x128xf32>
    %454 = math.exp %453 : vector<8x128xf32>
    %cst_101 = arith.constant 1.000000e+00 : f32
    %455 = vector.broadcast %cst_101 : f32 to vector<8x128xf32>
    %456 = arith.addf %455, %454 : vector<8x128xf32>
    %457 = arith.divf %455, %456 : vector<8x128xf32>
    %458 = arith.mulf %449, %406 : vector<8x128xf32>
    %459 = arith.mulf %443, %451 : vector<8x128xf32>
    %460 = arith.addf %458, %459 : vector<8x128xf32>
    %461 = math.tanh %460 : vector<8x128xf32>
    %462 = arith.mulf %457, %461 : vector<8x128xf32>
    %c7 = arith.constant 7 : index
    %c0_102 = arith.constant 0 : index
    %c0_103 = arith.constant 0 : index
    %463 = vector.load %arg4[%c7, %c0_102, %c0_103] : memref<10x8x128xf32, #tpu.memory_space<vmem>>, vector<1x8x128xf32>
    %464 = vector.shape_cast %463 : vector<1x8x128xf32> to vector<8x128xf32>
    %465 = arith.mulf %462, %464 : vector<8x128xf32>
    %466 = arith.addf %412, %465 : vector<8x128xf32>
    %467 = arith.mulf %462, %19 : vector<8x128xf32>
    %cst_104 = arith.constant dense<0.000000e+00> : vector<8xf32>
    %468 = vector.multi_reduction <add>, %467, %cst_104 [1] : vector<8x128xf32> to vector<8xf32>
    %469 = vector.shape_cast %468 : vector<8xf32> to vector<8x1xf32>
    %470 = vector.broadcast %469 : vector<8x1xf32> to vector<8x512xf32>
    %471 = arith.mulf %470, %8 : vector<8x512xf32>
    %472 = arith.mulf %462, %23 : vector<8x128xf32>
    %cst_105 = arith.constant dense<0.000000e+00> : vector<8xf32>
    %473 = vector.multi_reduction <add>, %472, %cst_105 [1] : vector<8x128xf32> to vector<8xf32>
    %474 = vector.shape_cast %473 : vector<8xf32> to vector<8x1xf32>
    %475 = vector.broadcast %474 : vector<8x1xf32> to vector<8x512xf32>
    %476 = arith.mulf %475, %10 : vector<8x512xf32>
    %477 = arith.mulf %462, %27 : vector<8x128xf32>
    %cst_106 = arith.constant dense<0.000000e+00> : vector<8xf32>
    %478 = vector.multi_reduction <add>, %477, %cst_106 [1] : vector<8x128xf32> to vector<8xf32>
    %479 = vector.shape_cast %478 : vector<8xf32> to vector<8x1xf32>
    %480 = vector.broadcast %479 : vector<8x1xf32> to vector<8x512xf32>
    %481 = arith.mulf %480, %12 : vector<8x512xf32>
    %482 = arith.mulf %462, %31 : vector<8x128xf32>
    %cst_107 = arith.constant dense<0.000000e+00> : vector<8xf32>
    %483 = vector.multi_reduction <add>, %482, %cst_107 [1] : vector<8x128xf32> to vector<8xf32>
    %484 = vector.shape_cast %483 : vector<8xf32> to vector<8x1xf32>
    %485 = vector.broadcast %484 : vector<8x1xf32> to vector<8x512xf32>
    %486 = arith.mulf %485, %14 : vector<8x512xf32>
    %487 = arith.addf %471, %476 : vector<8x512xf32>
    %488 = arith.addf %481, %486 : vector<8x512xf32>
    %489 = arith.addf %487, %488 : vector<8x512xf32>
    %c64 = arith.constant 64 : index
    %c0_108 = arith.constant 0 : index
    %490 = vector.load %arg7[%c64, %c0_108] : memref<80x512xf32, #tpu.memory_space<vmem>>, vector<8x512xf32>
    %491 = arith.addf %490, %489 : vector<8x512xf32>
    %492 = vector.extract_strided_slice %491 {offsets = [0, 0], sizes = [8, 128], strides = [1, 1]} : vector<8x512xf32> to vector<8x128xf32>
    %493 = arith.negf %492 : vector<8x128xf32>
    %494 = math.exp %493 : vector<8x128xf32>
    %cst_109 = arith.constant 1.000000e+00 : f32
    %495 = vector.broadcast %cst_109 : f32 to vector<8x128xf32>
    %496 = arith.addf %495, %494 : vector<8x128xf32>
    %497 = arith.divf %495, %496 : vector<8x128xf32>
    %498 = vector.extract_strided_slice %491 {offsets = [0, 128], sizes = [8, 128], strides = [1, 1]} : vector<8x512xf32> to vector<8x128xf32>
    %499 = arith.negf %498 : vector<8x128xf32>
    %500 = math.exp %499 : vector<8x128xf32>
    %cst_110 = arith.constant 1.000000e+00 : f32
    %501 = vector.broadcast %cst_110 : f32 to vector<8x128xf32>
    %502 = arith.addf %501, %500 : vector<8x128xf32>
    %503 = arith.divf %501, %502 : vector<8x128xf32>
    %504 = vector.extract_strided_slice %491 {offsets = [0, 256], sizes = [8, 128], strides = [1, 1]} : vector<8x512xf32> to vector<8x128xf32>
    %505 = math.tanh %504 : vector<8x128xf32>
    %506 = vector.extract_strided_slice %491 {offsets = [0, 384], sizes = [8, 128], strides = [1, 1]} : vector<8x512xf32> to vector<8x128xf32>
    %507 = arith.negf %506 : vector<8x128xf32>
    %508 = math.exp %507 : vector<8x128xf32>
    %cst_111 = arith.constant 1.000000e+00 : f32
    %509 = vector.broadcast %cst_111 : f32 to vector<8x128xf32>
    %510 = arith.addf %509, %508 : vector<8x128xf32>
    %511 = arith.divf %509, %510 : vector<8x128xf32>
    %512 = arith.mulf %503, %460 : vector<8x128xf32>
    %513 = arith.mulf %497, %505 : vector<8x128xf32>
    %514 = arith.addf %512, %513 : vector<8x128xf32>
    %515 = math.tanh %514 : vector<8x128xf32>
    %516 = arith.mulf %511, %515 : vector<8x128xf32>
    %c8_112 = arith.constant 8 : index
    %c0_113 = arith.constant 0 : index
    %c0_114 = arith.constant 0 : index
    %517 = vector.load %arg4[%c8_112, %c0_113, %c0_114] : memref<10x8x128xf32, #tpu.memory_space<vmem>>, vector<1x8x128xf32>
    %518 = vector.shape_cast %517 : vector<1x8x128xf32> to vector<8x128xf32>
    %519 = arith.mulf %516, %518 : vector<8x128xf32>
    %520 = arith.addf %466, %519 : vector<8x128xf32>
    %521 = arith.mulf %516, %19 : vector<8x128xf32>
    %cst_115 = arith.constant dense<0.000000e+00> : vector<8xf32>
    %522 = vector.multi_reduction <add>, %521, %cst_115 [1] : vector<8x128xf32> to vector<8xf32>
    %523 = vector.shape_cast %522 : vector<8xf32> to vector<8x1xf32>
    %524 = vector.broadcast %523 : vector<8x1xf32> to vector<8x512xf32>
    %525 = arith.mulf %524, %8 : vector<8x512xf32>
    %526 = arith.mulf %516, %23 : vector<8x128xf32>
    %cst_116 = arith.constant dense<0.000000e+00> : vector<8xf32>
    %527 = vector.multi_reduction <add>, %526, %cst_116 [1] : vector<8x128xf32> to vector<8xf32>
    %528 = vector.shape_cast %527 : vector<8xf32> to vector<8x1xf32>
    %529 = vector.broadcast %528 : vector<8x1xf32> to vector<8x512xf32>
    %530 = arith.mulf %529, %10 : vector<8x512xf32>
    %531 = arith.mulf %516, %27 : vector<8x128xf32>
    %cst_117 = arith.constant dense<0.000000e+00> : vector<8xf32>
    %532 = vector.multi_reduction <add>, %531, %cst_117 [1] : vector<8x128xf32> to vector<8xf32>
    %533 = vector.shape_cast %532 : vector<8xf32> to vector<8x1xf32>
    %534 = vector.broadcast %533 : vector<8x1xf32> to vector<8x512xf32>
    %535 = arith.mulf %534, %12 : vector<8x512xf32>
    %536 = arith.mulf %516, %31 : vector<8x128xf32>
    %cst_118 = arith.constant dense<0.000000e+00> : vector<8xf32>
    %537 = vector.multi_reduction <add>, %536, %cst_118 [1] : vector<8x128xf32> to vector<8xf32>
    %538 = vector.shape_cast %537 : vector<8xf32> to vector<8x1xf32>
    %539 = vector.broadcast %538 : vector<8x1xf32> to vector<8x512xf32>
    %540 = arith.mulf %539, %14 : vector<8x512xf32>
    %541 = arith.addf %525, %530 : vector<8x512xf32>
    %542 = arith.addf %535, %540 : vector<8x512xf32>
    %543 = arith.addf %541, %542 : vector<8x512xf32>
    %c72 = arith.constant 72 : index
    %c0_119 = arith.constant 0 : index
    %544 = vector.load %arg7[%c72, %c0_119] : memref<80x512xf32, #tpu.memory_space<vmem>>, vector<8x512xf32>
    %545 = arith.addf %544, %543 : vector<8x512xf32>
    %546 = vector.extract_strided_slice %545 {offsets = [0, 0], sizes = [8, 128], strides = [1, 1]} : vector<8x512xf32> to vector<8x128xf32>
    %547 = arith.negf %546 : vector<8x128xf32>
    %548 = math.exp %547 : vector<8x128xf32>
    %cst_120 = arith.constant 1.000000e+00 : f32
    %549 = vector.broadcast %cst_120 : f32 to vector<8x128xf32>
    %550 = arith.addf %549, %548 : vector<8x128xf32>
    %551 = arith.divf %549, %550 : vector<8x128xf32>
    %552 = vector.extract_strided_slice %545 {offsets = [0, 128], sizes = [8, 128], strides = [1, 1]} : vector<8x512xf32> to vector<8x128xf32>
    %553 = arith.negf %552 : vector<8x128xf32>
    %554 = math.exp %553 : vector<8x128xf32>
    %cst_121 = arith.constant 1.000000e+00 : f32
    %555 = vector.broadcast %cst_121 : f32 to vector<8x128xf32>
    %556 = arith.addf %555, %554 : vector<8x128xf32>
    %557 = arith.divf %555, %556 : vector<8x128xf32>
    %558 = vector.extract_strided_slice %545 {offsets = [0, 256], sizes = [8, 128], strides = [1, 1]} : vector<8x512xf32> to vector<8x128xf32>
    %559 = math.tanh %558 : vector<8x128xf32>
    %560 = vector.extract_strided_slice %545 {offsets = [0, 384], sizes = [8, 128], strides = [1, 1]} : vector<8x512xf32> to vector<8x128xf32>
    %561 = arith.negf %560 : vector<8x128xf32>
    %562 = math.exp %561 : vector<8x128xf32>
    %cst_122 = arith.constant 1.000000e+00 : f32
    %563 = vector.broadcast %cst_122 : f32 to vector<8x128xf32>
    %564 = arith.addf %563, %562 : vector<8x128xf32>
    %565 = arith.divf %563, %564 : vector<8x128xf32>
    %566 = arith.mulf %557, %514 : vector<8x128xf32>
    %567 = arith.mulf %551, %559 : vector<8x128xf32>
    %568 = arith.addf %566, %567 : vector<8x128xf32>
    %569 = math.tanh %568 : vector<8x128xf32>
    %570 = arith.mulf %565, %569 : vector<8x128xf32>
    %c9 = arith.constant 9 : index
    %c0_123 = arith.constant 0 : index
    %c0_124 = arith.constant 0 : index
    %571 = vector.load %arg4[%c9, %c0_123, %c0_124] : memref<10x8x128xf32, #tpu.memory_space<vmem>>, vector<1x8x128xf32>
    %572 = vector.shape_cast %571 : vector<1x8x128xf32> to vector<8x128xf32>
    %573 = arith.mulf %570, %572 : vector<8x128xf32>
    %574 = arith.addf %520, %573 : vector<8x128xf32>
    %cst_125 = arith.constant dense<0.000000e+00> : vector<8xf32>
    %575 = vector.multi_reduction <add>, %574, %cst_125 [1] : vector<8x128xf32> to vector<8xf32>
    %576 = vector.shape_cast %575 : vector<8xf32> to vector<8x1xf32>
    %c0_126 = arith.constant 0 : index
    %c0_127 = arith.constant 0 : index
    %577 = vector.load %arg5[%c0_126, %c0_127] : memref<1x1xf32, #tpu.memory_space<vmem>>, vector<1x1xf32>
    %578 = vector.broadcast %577 : vector<1x1xf32> to vector<8x1xf32>
    %579 = arith.addf %576, %578 : vector<8x1xf32>
    %c0_128 = arith.constant 0 : index
    %c0_129 = arith.constant 0 : index
    %580 = vector.load %arg6[%c0_128, %c0_129] : memref<8x1xf32, #tpu.memory_space<vmem>>, vector<8x1xf32>
    tpu.vector_store %arg6[%c0_128, %c0_129], %579 {strides = array<i32>} : memref<8x1xf32, #tpu.memory_space<vmem>>, vector<8x1xf32>,
    return
  }
}

</mosaic_0001>

<bundles_post_ra>
// kernel: _bilstm_forward.1
= control target key start
LH: loop header
LB: loop body
LE: loop exit
PB: predicated region body
PF: predicated region fallthrough
CT: control target
= control target key end

     0   :  { %s2386_s0 = inlined_call_operand.vmem [shape: f32[80,4], index: 0, kind: input, shape index: {}]   ;;  %s2387_s1 = inlined_call_operand.vmem [shape: f32[4,512], index: 1, kind: input, shape index: {}]   ;;  %s2388_s2 = inlined_call_operand.hbm [shape: f32[4,8,512], index: 2, kind: input, shape index: {}]   ;;  %s2389_s3 = inlined_call_operand.vmem [shape: f32[1,512], index: 3, kind: input, shape index: {}]   ;;  %s2390_s4 = inlined_call_operand.vmem [shape: f32[10,8,128], index: 4, kind: input, shape index: {}]   ;;  %s2391_s5 = inlined_call_operand.<no memory space> [shape: f32[1,1], index: 5, kind: input, shape index: {}]   ;;  %s2392_s6 = inlined_call_operand.vmem [shape: f32[8,1], index: 6, kind: output, shape index: {}]  }
   0x1   :  { %v11_v0 = vstv %s2391_s5 }
   0x2   :  { %12 = vst [vmem:[#allocation3] sm:$0x1] %v11_v0 }
   0x3   :  { %13 = vsyncpa [#allocation5], 0  ;;  %s22_s25 = sshll.u32 %s2388_s2, 4  ;;  %s1841_s26 = smov [#allocation4]   ;;  %s23_s25 = int_to_ptr.hbm [resolvable:$true] %s22_s25 }
   0x4   :  { %s24_s27 = sshll.u32 %s1841_s26, 4  ;;  %s1842_s28 = smov 512   ;;  %s25_s27 = int_to_ptr.vmem [resolvable:$true] %s24_s27 }
   0x5   :  { %s1843_s29 = smov 32  }
   0x6   :  { %30 = dma.hbm_to_vmem [thread:$0]  %s23_s25, 2048, %s25_s27, [#allocation5], %s1842_s28, %s1842_s28, %s1843_s29  }
   0x7   :  { %1839 = dma.done.wait [#allocation5], 2048  }
   0x8   :  { %1840 = vsyncadd [#allocation5], 4294965248  ;;  %v359_v1 = vlaneseq  ;;  %v1844_v3 = vmov 0.0   ;;  %v51_v8 = vld [vmem:[%s2387_s1] sm:$0xff]  ;;  %v52_v9 = vld [vmem:[%s2387_s1 + $0x8] sm:$0xff]  ;;  %vm103_vm4 = vcmask 1043456  }
   0x9   :  { %65 = vst [vmem:[#allocation1] ss:$2 sm:$0xff] %v51_v8  ;;  %v41_v14 = vld [vmem:[%s2386_s0] sm:$0xff]  ;;  %vm72_vm5 = vcmask 31744   ;;  %v1915_v21 = vld [vmem:[#allocation4 + $0x40] sm:$0xff]  ;;  %v1917_v22 = vld [vmem:[#allocation4 + $0x48] sm:$0xff] }
   0xa   :  { %v360_v2 = vand.u32 127, %v359_v1  ;;  %67 = vst [vmem:[#allocation1 + $0x10] ss:$2 sm:$0xff] %v52_v9  ;;  %v1919_v23 = vld [vmem:[#allocation4] sm:$0xff]  ;;  %v1921_v24 = vld [vmem:[#allocation4 + $0x8] sm:$0xff]  ;;  %v1946_v40 = vld [vmem:[#allocation4 + $0x58] sm:$0xff] }
   0xb   :  { %v1923_v25 = vld [vmem:[#allocation4 + $0x60] sm:$0xff]  ;;  %v1925_v27 = vld [vmem:[#allocation4 + $0x68] sm:$0xff]  ;;  %v53_v39 = vld [vmem:[%s2389_s3] sm:$0xf] }
   0xc   :  { %vm367_vm0 = vcmp.eq.s32.totalorder %v360_v2, 2  ;;  %vm361_vm1 = vcmp.eq.s32.totalorder %v360_v2, 0  ;;  %vm370_vm2 = vcmp.eq.s32.totalorder %v360_v2, 3  ;;  %vm364_vm3 = vcmp.eq.s32.totalorder %v360_v2, 1  ;;  %v1927_v29 = vld [vmem:[#allocation4 + $0x20] sm:$0xff]  ;;  %v1929_v30 = vld [vmem:[#allocation4 + $0x28] sm:$0xff] }
   0xd   :  { %v1886_v4 = vsel %vm367_vm0, 1.0, %v1844_v3  ;;  %v1888_v5 = vsel %vm361_vm1, 1.0, %v1844_v3  ;;  %v1898_v10 = vsel %vm370_vm2, 1.0, %v1844_v3  ;;  %v1900_v11 = vsel %vm364_vm3, 1.0, %v1844_v3  ;;  %v1952_v43 = vld [vmem:[#allocation4 + $0x18] sm:$0xff] }
   0xe   :  { %v387_v6 = vmul.f32 0.0, %v1886_v4  ;;  %v373_v7 = vmul.f32 0.0, %v1888_v5  ;;  %v394_v12 = vmul.f32 0.0, %v1898_v10  ;;  %v380_v13 = vmul.f32 0.0, %v1900_v11  ;;  %v1954_v44 = vld [vmem:[#allocation4 + $0x78] sm:$0xff] }
   0xf   :  { %v1948_v41 = vperm.slane %v53_v39, 0  ;;  %v1950_v42 = vperm.slane %v53_v39, 1  ;;  %v1956_v45 = vld [vmem:[#allocation4 + $0x38] sm:$0xff]  ;;  %v1966_v62 = vperm.slane %v53_v39, 3 }
  0x10   :  { %388 = vadd.xlane.f32.xlu1 %v387_v6  ;;  %374 = vadd.xlane.f32.xlu0 %v373_v7  ;;  %v68_v15 = vld.sshfl [vmem:[#allocation1] sm:$0xff pattern:$0x75316420]  ;;  %v69_v16 = vld.sshfl [vmem:[#allocation1 + $0x8] sm:$0xff pattern:$0x75316420] }
  0x11   :  { %v70_v17 = vld.sshfl [vmem:[#allocation1 + $0x10] sm:$0xff pattern:$0x75316420]  ;;  %v71_v18 = vld.sshfl [vmem:[#allocation1 + $0x18] sm:$0xff pattern:$0x75316420]  ;;  %1536 = vmatpush.msk.msra.mxu0 %vm103_vm4, %v68_v15  ;;  %1547 = vmatpush.msk.msra.mxu1 %vm103_vm4, %v69_v16 }
  0x12   :  { %1558 = vmatpush.msk.msra.mxu2 %vm103_vm4, %v70_v17  ;;  %1569 = vmatpush.msk.msra.mxu3 %vm103_vm4, %v71_v18  ;;  %v42_v3 = vld [vmem:[%s2386_s0 + $0x8] sm:$0xff]  ;;  %v1973_v7 = vld [vmem:[#allocation4 + $0x50] sm:$0xff] }
  0x13   :  { %1537 = vmatmul.msk.f32.vlgmr.msra.gmra.mxu0 %vm72_vm5, %v41_v14  ;;  %1548 = vmatmul.msk.f32.vlgmr.msra.gmra.mxu1 %vm72_vm5, %v41_v14 }
  0x14   :  { %1559 = vmatmul.msk.f32.vlgmr.msra.gmra.mxu2 %vm72_vm5, %v41_v14  ;;  %1570 = vmatmul.msk.f32.vlgmr.msra.gmra.mxu3 %vm72_vm5, %v41_v14  ;;  %v1982_v14 = vld [vmem:[#allocation4 + $0x30] sm:$0xff] }
  0x18   :  { %395 = vadd.xlane.f32.xlu1 %v394_v12  ;;  %381 = vadd.xlane.f32.xlu0 %v380_v13  ;;  %v1978_v12 = vld [vmem:[#allocation4 + $0x10] sm:$0xff] }
  0x19   :  { %v1980_v13 = vld [vmem:[#allocation4 + $0x70] sm:$0xff] }
  0x1b   :  { %1538 = vmatmul.msk.f32.gmra.mxu0 %vm72_vm5, %v42_v3  ;;  %1549 = vmatmul.msk.f32.gmra.mxu1 %vm72_vm5, %v42_v3 }
  0x1c   :  { %1560 = vmatmul.msk.f32.gmra.mxu2 %vm72_vm5, %v42_v3  ;;  %1571 = vmatmul.msk.f32.gmra.mxu3 %vm72_vm5, %v42_v3 }
  0x83   :  { %v1911_v19 = vpop.xlane.xlu1 %388  ;;  %v1913_v20 = vpop.xlane.xlu0 %374 }
  0x84   :  { %v390_v31 = vmul.f32 %v1911_v19, %v1915_v21  ;;  %v391_v32 = vmul.f32 %v1911_v19, %v1917_v22  ;;  %v376_v33 = vmul.f32 %v1913_v20, %v1919_v23  ;;  %v377_v34 = vmul.f32 %v1913_v20, %v1921_v24 }
  0x85   :  { %v393_v50 = vmul.f32 %v1911_v19, %v1946_v40  ;;  %v379_v51 = vmul.f32 %v1913_v20, %v1952_v43  ;;  %v392_v16 = vmul.f32 %v1911_v19, %v1973_v7  ;;  %v378_v17 = vmul.f32 %v1913_v20, %v1978_v12 }
  0x8b   :  { %v396_v26 = vpop.xlane.xlu1 %395  ;;  %v382_v28 = vpop.xlane.xlu0 %381 }
  0x8c   :  { %v397_v35 = vmul.f32 %v396_v26, %v1923_v25  ;;  %v398_v36 = vmul.f32 %v396_v26, %v1925_v27  ;;  %v383_v37 = vmul.f32 %v382_v28, %v1927_v29  ;;  %v384_v38 = vmul.f32 %v382_v28, %v1929_v30 }
  0x8d   :  { %v400_v52 = vmul.f32 %v396_v26, %v1954_v44  ;;  %v386_v53 = vmul.f32 %v382_v28, %v1956_v45  ;;  %v399_v18 = vmul.f32 %v396_v26, %v1980_v13 }
  0x8e   :  { %v401_v46 = vadd.f32 %v383_v37, %v376_v33  ;;  %v405_v47 = vadd.f32 %v397_v35, %v390_v31  ;;  %v402_v48 = vadd.f32 %v384_v38, %v377_v34  ;;  %v406_v49 = vadd.f32 %v398_v36, %v391_v32 }
  0x8f   :  { %v404_v63 = vadd.f32 %v386_v53, %v379_v51  ;;  %v408_v0 = vadd.f32 %v400_v52, %v393_v50  ;;  %v385_v31 = vmul.f32 %v382_v28, %v1982_v14  ;;  %v1990_v36 = vperm.slane %v53_v39, 2 }
  0x90   :  { %v129_v54 = vpop.f32.mrf.mxu0  ;;  %v176_v55 = vpop.f32.mrf.mxu1  ;;  %v409_v57 = vadd.f32 %v405_v47, %v401_v46  ;;  %v410_v59 = vadd.f32 %v406_v49, %v402_v48  ;;  %v407_v47 = vadd.f32 %v399_v18, %v392_v16 }
  0x91   :  { %v130_v56 = vadd.f32 %v129_v54, %v1948_v41  ;;  %v177_v58 = vadd.f32 %v176_v55, %v1950_v42  ;;  %v412_v9 = vadd.f32 %v408_v0, %v404_v63  ;;  %v403_v46 = vadd.f32 %v385_v31, %v378_v17 }
  0x93   :  { %v417_v60 = vadd.f32 %v409_v57, %v130_v56  ;;  %v418_v61 = vadd.f32 %v410_v59, %v177_v58  ;;  %v411_v48 = vadd.f32 %v407_v47, %v403_v46 }
  0x95   :  { %v1584_v1 = vmul.f32 -1.442695, %v417_v60  ;;  %v1585_v2 = vmul.f32 -1.442695, %v418_v61 }
  0x97   :  { %1628 = vpow2.f32 %v1584_v1  ;;  %v270_v6 = vpop.f32.mrf.mxu3  ;;  %v223_v38 = vpop.f32.mrf.mxu2 }
  0x98   :  { %1630 = vpow2.f32 %v1585_v2  ;;  %v271_v8 = vadd.f32 %v270_v6, %v1966_v62  ;;  %v224_v19 = vadd.f32 %v223_v38, %v1990_v36 }
  0x9a   :  { %v420_v15 = vadd.f32 %v412_v9, %v271_v8  ;;  %v419_v28 = vadd.f32 %v411_v48, %v224_v19 }
  0x9c   :  { %v1586_v32 = vmul.f32 -1.442695, %v420_v15 }
  0x9d   :  { %v1629_v33 = vpop.eup %1628 }
  0x9e   :  { %v1631_v34 = vpop.eup %1630  ;;  %v424_v35 = vadd.f32 1.0, %v1629_v33  ;;  %1632 = vpow2.f32 %v1586_v32 }
  0x9f   :  { %v443_v37 = vadd.f32 1.0, %v1631_v34 }
  0xa0   :  { %1634 = vrcp.f32 %v424_v35  ;;  %v436_v54 = vand.u32 2147483648, %v424_v35  ;;  %v434_v57 = vand.u32 2147483647, %v424_v35  ;;  %vm430_vm8 = vweird.f32 %v424_v35 }
  0xa1   :  { %1636 = vrcp.f32 %v443_v37  ;;  %v455_v55 = vand.u32 2147483648, %v443_v37  ;;  %v453_v59 = vand.u32 2147483647, %v443_v37  ;;  %vm449_vm9 = vweird.f32 %v443_v37 }
  0xa2   :  { %v437_v63 = vor.u32 1.1754944e-38, %v436_v54  ;;  %vm435_vm11 = vcmp.eq.f32.partialorder %v434_v57, 8.507059e+37 }
  0xa3   :  { %v456_v2 = vor.u32 1.1754944e-38, %v455_v55  ;;  %vm454_vm13 = vcmp.eq.f32.partialorder %v453_v59, 8.507059e+37  ;;  %v273_v59 = vpop.f32.mrf.mxu3 }
  0xa4   :  { %v1633_v20 = vpop.eup %1632 }
  0xa5   :  { %v463_v26 = vadd.f32 1.0, %v1633_v20 }
  0xa6   :  { %v1635_v49 = vpop.eup %1634 }
  0xa7   :  { %v1637_v50 = vpop.eup %1636  ;;  %v426_v51 = vmul.f32 %v1635_v49, %v424_v35  ;;  %1638 = vrcp.f32 %v463_v26  ;;  %vm431_vm6 = vweird.f32 %v1635_v49  ;;  %v475_v34 = vand.u32 2147483648, %v463_v26 }
  0xa8   :  { %v445_v52 = vmul.f32 %v1637_v50, %v443_v37  ;;  %1640 = vtanh.f32 %v419_v28  ;;  %vm450_vm7 = vweird.f32 %v1637_v50  ;;  %vm432_vm10 = vmor %vm430_vm8, %vm431_vm6  ;;  %vm469_vm15 = vweird.f32 %v463_v26 }
  0xa9   :  { %v427_v39 = vsub.f32 1.0, %v426_v51  ;;  %vm451_vm12 = vmor %vm449_vm9, %vm450_vm7  ;;  %v473_v35 = vand.u32 2147483647, %v463_v26  ;;  %v476_v38 = vor.u32 1.1754944e-38, %v475_v34 }
  0xaa   :  { %v446_v53 = vsub.f32 1.0, %v445_v52  ;;  %v132_v52 = vpop.f32.mrf.mxu0 }
  0xab   :  { %v428_v56 = vmul.f32 %v1635_v49, %v427_v39  ;;  %vm474_vm1 = vcmp.eq.f32.partialorder %v473_v35, 8.507059e+37 }
  0xac   :  { %v447_v58 = vmul.f32 %v1637_v50, %v446_v53 }
  0xad   :  { %v1639_v60 = vpop.eup %1638  ;;  %v429_v61 = vadd.f32 %v1635_v49, %v428_v56 }
  0xae   :  { %v448_v0 = vadd.f32 %v1637_v50, %v447_v58  ;;  %v465_v1 = vmul.f32 %v1639_v60, %v463_v26  ;;  %v1641_v6 = vpop.eup %1640  ;;  %vm470_vm14 = vweird.f32 %v1639_v60  ;;  %v179_v58 = vpop.f32.mrf.mxu1 }
  0xaf   :  { %v433_v3 = vsel %vm432_vm10, %v1635_v49, %v429_v61  ;;  %vm471_vm0 = vmor %vm469_vm15, %vm470_vm14 }
  0xb0   :  { %v438_v8 = vsel %vm435_vm11, %v437_v63, %v433_v3  ;;  %v452_v9 = vsel %vm451_vm12, %v1637_v50, %v448_v0  ;;  %v466_v15 = vsub.f32 1.0, %v465_v1  ;;  %v133_v0 = vadd.f32 %v132_v52, %v1948_v41 }
  0xb1   :  { %v457_v16 = vsel %vm454_vm13, %v456_v2, %v452_v9  ;;  %v480_v17 = vmul.f32 %v1641_v6, %v438_v8  ;;  %v180_v9 = vadd.f32 %v179_v58, %v1950_v42 }
  0xb2   :  { %v479_v18 = vmul.f32 0.0, %v457_v16  ;;  %v467_v31 = vmul.f32 %v1639_v60, %v466_v15  ;;  %v274_v16 = vadd.f32 %v273_v59, %v1966_v62 }
  0xb4   :  { %v1993_v32 = vadd.f32 %v480_v17, %v479_v18  ;;  %v468_v33 = vadd.f32 %v1639_v60, %v467_v31 }
  0xb6   :  { %1642 = vtanh.f32 %v1993_v32  ;;  %v472_v37 = vsel %vm471_vm0, %v1639_v60, %v468_v33 }
  0xb7   :  { %v477_v47 = vsel %vm474_vm1, %v476_v38, %v472_v37 }
  0xbc   :  { %v1643_v46 = vpop.eup %1642 }
  0xbd   :  { %v1996_v19 = vmul.f32 %v1643_v46, %v477_v47 }
  0xbf   :  { %v508_v20 = vmul.f32 %v1898_v10, %v1996_v19  ;;  %v501_v48 = vmul.f32 %v1886_v4, %v1996_v19  ;;  %v487_v49 = vmul.f32 %v1888_v5, %v1996_v19  ;;  %v494_v26 = vmul.f32 %v1900_v11, %v1996_v19 }
  0xc1   :  { %509 = vadd.xlane.f32.xlu1 %v508_v20  ;;  %502 = vadd.xlane.f32.xlu0 %v501_v48 }
  0xc2   :  { %488 = vadd.xlane.f32.xlu2 %v487_v49 }
  0xca   :  { %495 = vadd.xlane.f32.xlu2 %v494_v26  ;;  %v43_v26 = vld [vmem:[%s2386_s0 + $0x10] sm:$0xff] }
  0xcb   :  { %1561 = vmatmul.msk.f32.gmra.mxu2 %vm72_vm5, %v43_v26  ;;  %1572 = vmatmul.msk.f32.gmra.mxu3 %vm72_vm5, %v43_v26 }
  0xcc   :  { %1539 = vmatmul.msk.f32.gmra.mxu0 %vm72_vm5, %v43_v26  ;;  %1550 = vmatmul.msk.f32.gmra.mxu1 %vm72_vm5, %v43_v26 }
 0x134   :  { %v510_v50 = vpop.xlane.xlu1 %509  ;;  %v503_v51 = vpop.xlane.xlu0 %502 }
 0x135   :  { %v489_v28 = vpop.xlane.xlu2 %488  ;;  %v511_v39 = vmul.f32 %v510_v50, %v1923_v25  ;;  %v512_v53 = vmul.f32 %v510_v50, %v1925_v27  ;;  %v504_v54 = vmul.f32 %v503_v51, %v1915_v21  ;;  %v505_v55 = vmul.f32 %v503_v51, %v1917_v22 }
 0x136   :  { %v514_v56 = vmul.f32 %v510_v50, %v1954_v44  ;;  %v507_v57 = vmul.f32 %v503_v51, %v1946_v40  ;;  %v490_v60 = vmul.f32 %v489_v28, %v1919_v23  ;;  %v491_v61 = vmul.f32 %v489_v28, %v1921_v24 }
 0x137   :  { %v493_v1 = vmul.f32 %v489_v28, %v1952_v43  ;;  %v519_v8 = vadd.f32 %v511_v39, %v504_v54  ;;  %v520_v15 = vadd.f32 %v512_v53, %v505_v55  ;;  %v513_v39 = vmul.f32 %v510_v50, %v1980_v13 }
 0x138   :  { %v522_v33 = vadd.f32 %v514_v56, %v507_v57  ;;  %v506_v53 = vmul.f32 %v503_v51, %v1973_v7  ;;  %v492_v54 = vmul.f32 %v489_v28, %v1978_v12 }
 0x13d   :  { %v496_v63 = vpop.xlane.xlu2 %495 }
 0x13e   :  { %v497_v2 = vmul.f32 %v496_v63, %v1927_v29  ;;  %v498_v3 = vmul.f32 %v496_v63, %v1929_v30  ;;  %v500_v6 = vmul.f32 %v496_v63, %v1956_v45  ;;  %v499_v52 = vmul.f32 %v496_v63, %v1982_v14 }
 0x140   :  { %v515_v17 = vadd.f32 %v497_v2, %v490_v60  ;;  %v516_v18 = vadd.f32 %v498_v3, %v491_v61  ;;  %v518_v31 = vadd.f32 %v500_v6, %v493_v1  ;;  %v517_v58 = vadd.f32 %v499_v52, %v492_v54  ;;  %v226_v61 = vpop.f32.mrf.mxu2 }
 0x141   :  { %v227_v1 = vadd.f32 %v226_v61, %v1990_v36 }
 0x142   :  { %v523_v34 = vadd.f32 %v519_v8, %v515_v17  ;;  %v524_v35 = vadd.f32 %v520_v15, %v516_v18  ;;  %v526_v37 = vadd.f32 %v522_v33, %v518_v31 }
 0x144   :  { %v531_v38 = vadd.f32 %v523_v34, %v133_v0  ;;  %v532_v46 = vadd.f32 %v524_v35, %v180_v9  ;;  %v534_v47 = vadd.f32 %v526_v37, %v274_v16  ;;  %v521_v0 = vadd.f32 %v513_v39, %v506_v53 }
 0x146   :  { %v1587_v20 = vmul.f32 -1.442695, %v531_v38  ;;  %v1588_v48 = vmul.f32 -1.442695, %v532_v46  ;;  %v1589_v49 = vmul.f32 -1.442695, %v534_v47  ;;  %v525_v2 = vadd.f32 %v521_v0, %v517_v58 }
 0x148   :  { %1644 = vpow2.f32 %v1587_v20  ;;  %v533_v3 = vadd.f32 %v525_v2, %v227_v1 }
 0x149   :  { %1646 = vpow2.f32 %v1588_v48 }
 0x14a   :  { %1648 = vpow2.f32 %v1589_v49 }
 0x14e   :  { %v1645_v55 = vpop.eup %1644 }
 0x14f   :  { %v1647_v56 = vpop.eup %1646  ;;  %v538_v57 = vadd.f32 1.0, %v1645_v55 }
 0x150   :  { %v1649_v59 = vpop.eup %1648  ;;  %v557_v60 = vadd.f32 1.0, %v1647_v56 }
 0x151   :  { %1650 = vrcp.f32 %v538_v57  ;;  %v577_v63 = vadd.f32 1.0, %v1649_v59  ;;  %v548_v16 = vand.u32 2147483647, %v538_v57  ;;  %v550_v17 = vand.u32 2147483648, %v538_v57 }
 0x152   :  { %1652 = vrcp.f32 %v557_v60  ;;  %v569_v18 = vand.u32 2147483648, %v557_v60  ;;  %v567_v35 = vand.u32 2147483647, %v557_v60  ;;  %vm544_vm4 = vweird.f32 %v538_v57 }
 0x153   :  { %1654 = vrcp.f32 %v577_v63  ;;  %vm563_vm6 = vweird.f32 %v557_v60  ;;  %v551_v46 = vor.u32 1.1754944e-38, %v550_v17  ;;  %vm549_vm9 = vcmp.eq.f32.partialorder %v548_v16, 8.507059e+37 }
 0x154   :  { %1656 = vtanh.f32 %v533_v3  ;;  %v570_v20 = vor.u32 1.1754944e-38, %v569_v18  ;;  %vm568_vm10 = vcmp.eq.f32.partialorder %v567_v35, 8.507059e+37  ;;  %v589_v58 = vand.u32 2147483648, %v577_v63  ;;  %v135_v18 = vpop.f32.mrf.mxu0 }
 0x155   :  { %vm583_vm12 = vweird.f32 %v577_v63  ;;  %v587_v59 = vand.u32 2147483647, %v577_v63 }
 0x156   :  { %v590_v61 = vor.u32 1.1754944e-38, %v589_v58 }
 0x157   :  { %v1651_v50 = vpop.eup %1650  ;;  %vm588_vm14 = vcmp.eq.f32.partialorder %v587_v59, 8.507059e+37 }
 0x158   :  { %v1653_v51 = vpop.eup %1652  ;;  %v540_v6 = vmul.f32 %v1651_v50, %v538_v57  ;;  %vm545_vm2 = vweird.f32 %v1651_v50 }
 0x159   :  { %v559_v28 = vmul.f32 %v1653_v51, %v557_v60  ;;  %v1655_v9 = vpop.eup %1654  ;;  %vm564_vm3 = vweird.f32 %v1653_v51  ;;  %vm546_vm7 = vmor %vm544_vm4, %vm545_vm2 }
 0x15a   :  { %v541_v8 = vsub.f32 1.0, %v540_v6  ;;  %v579_v33 = vmul.f32 %v1655_v9, %v577_v63  ;;  %vm565_vm8 = vmor %vm563_vm6, %vm564_vm3  ;;  %v1657_v49 = vpop.eup %1656  ;;  %vm584_vm11 = vweird.f32 %v1655_v9 }
 0x15b   :  { %v560_v15 = vsub.f32 1.0, %v559_v28  ;;  %vm585_vm13 = vmor %vm583_vm12, %vm584_vm11 }
 0x15c   :  { %v542_v31 = vmul.f32 %v1651_v50, %v541_v8  ;;  %v580_v38 = vsub.f32 1.0, %v579_v33 }
 0x15d   :  { %v561_v34 = vmul.f32 %v1653_v51, %v560_v15 }
 0x15e   :  { %v543_v37 = vadd.f32 %v1651_v50, %v542_v31  ;;  %v581_v54 = vmul.f32 %v1655_v9, %v580_v38  ;;  %v182_v38 = vpop.f32.mrf.mxu1 }
 0x15f   :  { %v562_v47 = vadd.f32 %v1653_v51, %v561_v34 }
 0x160   :  { %v547_v48 = vsel %vm546_vm7, %v1651_v50, %v543_v37  ;;  %v582_v57 = vadd.f32 %v1655_v9, %v581_v54  ;;  %v1590_v50 = vld [vmem:[%s2390_s4 + $0x8] sm:$0xff] }
 0x161   :  { %v552_v26 = vsel %vm549_vm9, %v551_v46, %v547_v48  ;;  %v566_v52 = vsel %vm565_vm8, %v1653_v51, %v562_v47  ;;  %v276_v46 = vpop.f32.mrf.mxu3 }
 0x162   :  { %v571_v39 = vsel %vm568_vm10, %v570_v20, %v566_v52  ;;  %v594_v53 = vmul.f32 %v1657_v49, %v552_v26  ;;  %v586_v60 = vsel %vm585_vm13, %v1655_v9, %v582_v57  ;;  %v136_v49 = vadd.f32 %v135_v18, %v1948_v41 }
 0x163   :  { %v593_v55 = vmul.f32 %v571_v39, %v1993_v32  ;;  %v591_v1 = vsel %vm588_vm14, %v590_v61, %v586_v60  ;;  %v484_v32 = vld [vmem:[%s2390_s4] sm:$0xff]  ;;  %v277_v58 = vadd.f32 %v276_v46, %v1966_v62 }
 0x164   :  { %v485_v6 = vmul.f32 %v484_v32, %v1996_v19 }
 0x165   :  { %v2034_v56 = vadd.f32 %v594_v53, %v593_v55  ;;  %v183_v55 = vadd.f32 %v182_v38, %v1950_v42 }
 0x167   :  { %1658 = vtanh.f32 %v2034_v56 }
 0x16d   :  { %v1659_v0 = vpop.eup %1658 }
 0x16e   :  { %v597_v2 = vmul.f32 %v1659_v0, %v591_v1 }
 0x170   :  { %v616_v3 = vmul.f32 %v1886_v4, %v597_v2  ;;  %v609_v51 = vmul.f32 %v1900_v11, %v597_v2  ;;  %v602_v63 = vmul.f32 %v1888_v5, %v597_v2  ;;  %v600_v28 = vmul.f32 %v1590_v50, %v597_v2 }
 0x171   :  { %v623_v9 = vmul.f32 %v1898_v10, %v597_v2 }
 0x172   :  { %617 = vadd.xlane.f32.xlu1 %v616_v3  ;;  %610 = vadd.xlane.f32.xlu0 %v609_v51  ;;  %v2047_v8 = vadd.f32 %v600_v28, %v485_v6 }
 0x173   :  { %603 = vadd.xlane.f32.xlu2 %v602_v63 }
 0x17b   :  { %624 = vadd.xlane.f32.xlu2 %v623_v9  ;;  %v44_v9 = vld [vmem:[%s2386_s0 + $0x18] sm:$0xff] }
 0x17c   :  { %1562 = vmatmul.msk.f32.gmra.mxu2 %vm72_vm5, %v44_v9  ;;  %1573 = vmatmul.msk.f32.gmra.mxu3 %vm72_vm5, %v44_v9 }
 0x17d   :  { %1540 = vmatmul.msk.f32.gmra.mxu0 %vm72_vm5, %v44_v9  ;;  %1551 = vmatmul.msk.f32.gmra.mxu1 %vm72_vm5, %v44_v9 }
 0x1e5   :  { %v611_v16 = vpop.xlane.xlu0 %610  ;;  %v618_v17 = vpop.xlane.xlu1 %617 }
 0x1e6   :  { %v604_v15 = vpop.xlane.xlu2 %603  ;;  %v612_v31 = vmul.f32 %v611_v16, %v1927_v29  ;;  %v613_v33 = vmul.f32 %v611_v16, %v1929_v30  ;;  %v615_v35 = vmul.f32 %v611_v16, %v1956_v45  ;;  %v619_v47 = vmul.f32 %v618_v17, %v1915_v21 }
 0x1e7   :  { %v605_v34 = vmul.f32 %v604_v15, %v1919_v23  ;;  %v606_v19 = vmul.f32 %v604_v15, %v1921_v24  ;;  %v608_v37 = vmul.f32 %v604_v15, %v1952_v43  ;;  %v620_v20 = vmul.f32 %v618_v17, %v1917_v22 }
 0x1e8   :  { %v622_v26 = vmul.f32 %v618_v17, %v1946_v40 }
 0x1e9   :  { %v630_v54 = vadd.f32 %v612_v31, %v605_v34  ;;  %v631_v57 = vadd.f32 %v613_v33, %v606_v19  ;;  %v633_v61 = vadd.f32 %v615_v35, %v608_v37  ;;  %v621_v31 = vmul.f32 %v618_v17, %v1973_v7 }
 0x1ea   :  { %v614_v33 = vmul.f32 %v611_v16, %v1982_v14  ;;  %v607_v34 = vmul.f32 %v604_v15, %v1978_v12 }
 0x1ee   :  { %v625_v48 = vpop.xlane.xlu2 %624 }
 0x1ef   :  { %v626_v52 = vmul.f32 %v625_v48, %v1923_v25  ;;  %v627_v39 = vmul.f32 %v625_v48, %v1925_v27  ;;  %v629_v53 = vmul.f32 %v625_v48, %v1954_v44  ;;  %v628_v18 = vmul.f32 %v625_v48, %v1980_v13 }
 0x1f1   :  { %v634_v59 = vadd.f32 %v626_v52, %v619_v47  ;;  %v635_v60 = vadd.f32 %v627_v39, %v620_v20  ;;  %v637_v0 = vadd.f32 %v629_v53, %v622_v26  ;;  %v636_v38 = vadd.f32 %v628_v18, %v621_v31  ;;  %v229_v20 = vpop.f32.mrf.mxu2 }
 0x1f2   :  { %v230_v26 = vadd.f32 %v229_v20, %v1990_v36 }
 0x1f3   :  { %v638_v1 = vadd.f32 %v634_v59, %v630_v54  ;;  %v639_v2 = vadd.f32 %v635_v60, %v631_v57  ;;  %v641_v32 = vadd.f32 %v637_v0, %v633_v61 }
 0x1f5   :  { %v646_v50 = vadd.f32 %v638_v1, %v136_v49  ;;  %v647_v3 = vadd.f32 %v639_v2, %v183_v55  ;;  %v649_v51 = vadd.f32 %v641_v32, %v277_v58  ;;  %v632_v49 = vadd.f32 %v614_v33, %v607_v34 }
 0x1f7   :  { %v1591_v63 = vmul.f32 -1.442695, %v646_v50  ;;  %v1592_v6 = vmul.f32 -1.442695, %v647_v3  ;;  %v1593_v28 = vmul.f32 -1.442695, %v649_v51  ;;  %v640_v52 = vadd.f32 %v636_v38, %v632_v49 }
 0x1f9   :  { %1660 = vpow2.f32 %v1591_v63  ;;  %v648_v39 = vadd.f32 %v640_v52, %v230_v26 }
 0x1fa   :  { %1662 = vpow2.f32 %v1592_v6 }
 0x1fb   :  { %1664 = vpow2.f32 %v1593_v28 }
 0x1ff   :  { %v1661_v19 = vpop.eup %1660 }
 0x200   :  { %v1663_v35 = vpop.eup %1662  ;;  %v653_v37 = vadd.f32 1.0, %v1661_v19 }
 0x201   :  { %v1665_v46 = vpop.eup %1664  ;;  %v672_v47 = vadd.f32 1.0, %v1663_v35 }
 0x202   :  { %1666 = vrcp.f32 %v653_v37  ;;  %v692_v48 = vadd.f32 1.0, %v1665_v46  ;;  %v663_v58 = vand.u32 2147483647, %v653_v37  ;;  %v665_v59 = vand.u32 2147483648, %v653_v37 }
 0x203   :  { %1668 = vrcp.f32 %v672_v47  ;;  %v684_v60 = vand.u32 2147483648, %v672_v47  ;;  %v682_v2 = vand.u32 2147483647, %v672_v47  ;;  %vm659_vm1 = vweird.f32 %v653_v37 }
 0x204   :  { %1670 = vrcp.f32 %v692_v48  ;;  %vm678_vm2 = vweird.f32 %v672_v47  ;;  %v666_v3 = vor.u32 1.1754944e-38, %v665_v59  ;;  %vm664_vm6 = vcmp.eq.f32.partialorder %v663_v58, 8.507059e+37  ;;  %v138_v58 = vpop.f32.mrf.mxu0 }
 0x205   :  { %1672 = vtanh.f32 %v648_v39  ;;  %v685_v63 = vor.u32 1.1754944e-38, %v684_v60  ;;  %vm683_vm7 = vcmp.eq.f32.partialorder %v682_v2, 8.507059e+37  ;;  %v704_v38 = vand.u32 2147483648, %v692_v48  ;;  %v185_v2 = vpop.f32.mrf.mxu1 }
 0x206   :  { %vm698_vm9 = vweird.f32 %v692_v48  ;;  %v702_v46 = vand.u32 2147483647, %v692_v48 }
 0x207   :  { %v705_v20 = vor.u32 1.1754944e-38, %v704_v38 }
 0x208   :  { %v1667_v17 = vpop.eup %1666  ;;  %vm703_vm11 = vcmp.eq.f32.partialorder %v702_v46, 8.507059e+37 }
 0x209   :  { %v1669_v16 = vpop.eup %1668  ;;  %v655_v53 = vmul.f32 %v1667_v17, %v653_v37  ;;  %vm660_vm15 = vweird.f32 %v1667_v17 }
 0x20a   :  { %v674_v15 = vmul.f32 %v1669_v16, %v672_v47  ;;  %v1671_v55 = vpop.eup %1670  ;;  %vm679_vm0 = vweird.f32 %v1669_v16  ;;  %vm661_vm3 = vmor %vm659_vm1, %vm660_vm15 }
 0x20b   :  { %v656_v54 = vsub.f32 1.0, %v655_v53  ;;  %v694_v0 = vmul.f32 %v1671_v55, %v692_v48  ;;  %vm680_vm4 = vmor %vm678_vm2, %vm679_vm0  ;;  %v1673_v28 = vpop.eup %1672  ;;  %vm699_vm8 = vweird.f32 %v1671_v55 }
 0x20c   :  { %v675_v57 = vsub.f32 1.0, %v674_v15  ;;  %vm700_vm10 = vmor %vm698_vm9, %vm699_vm8 }
 0x20d   :  { %v657_v61 = vmul.f32 %v1667_v17, %v656_v54  ;;  %v695_v50 = vsub.f32 1.0, %v694_v0 }
 0x20e   :  { %v676_v1 = vmul.f32 %v1669_v16, %v675_v57 }
 0x20f   :  { %v658_v32 = vadd.f32 %v1667_v17, %v657_v61  ;;  %v696_v34 = vmul.f32 %v1671_v55, %v695_v50 }
 0x210   :  { %v677_v51 = vadd.f32 %v1669_v16, %v676_v1 }
 0x211   :  { %v662_v6 = vsel %vm661_vm3, %v1667_v17, %v658_v32  ;;  %v697_v37 = vadd.f32 %v1671_v55, %v696_v34  ;;  %v279_v32 = vpop.f32.mrf.mxu3 }
 0x212   :  { %v667_v9 = vsel %vm664_vm6, %v666_v3, %v662_v6  ;;  %v681_v18 = vsel %vm680_vm4, %v1669_v16, %v677_v51 }
 0x213   :  { %v686_v31 = vsel %vm683_vm7, %v685_v63, %v681_v18  ;;  %v709_v33 = vmul.f32 %v1673_v28, %v667_v9  ;;  %v701_v47 = vsel %vm700_vm10, %v1671_v55, %v697_v37  ;;  %v139_v63 = vadd.f32 %v138_v58, %v1948_v41  ;;  %v232_v58 = vpop.f32.mrf.mxu2 }
 0x214   :  { %v708_v19 = vmul.f32 %v686_v31, %v2034_v56  ;;  %v706_v26 = vsel %vm703_vm11, %v705_v20, %v701_v47  ;;  %v1594_v56 = vld [vmem:[%s2390_s4 + $0x10] sm:$0xff]  ;;  %v186_v28 = vadd.f32 %v185_v2, %v1950_v42  ;;  %v280_v18 = vadd.f32 %v279_v32, %v1966_v62 }
 0x216   :  { %v2078_v35 = vadd.f32 %v709_v33, %v708_v19 }
 0x218   :  { %1674 = vtanh.f32 %v2078_v35 }
 0x21e   :  { %v1675_v49 = vpop.eup %1674 }
 0x21f   :  { %v712_v52 = vmul.f32 %v1675_v49, %v706_v26 }
 0x221   :  { %v731_v17 = vmul.f32 %v1886_v4, %v712_v52  ;;  %v724_v39 = vmul.f32 %v1900_v11, %v712_v52  ;;  %v717_v16 = vmul.f32 %v1888_v5, %v712_v52  ;;  %v715_v53 = vmul.f32 %v1594_v56, %v712_v52 }
 0x222   :  { %v738_v15 = vmul.f32 %v1898_v10, %v712_v52 }
 0x223   :  { %732 = vadd.xlane.f32.xlu2 %v731_v17  ;;  %725 = vadd.xlane.f32.xlu1 %v724_v39  ;;  %v2088_v48 = vadd.f32 %v715_v53, %v2047_v8 }
 0x224   :  { %718 = vadd.xlane.f32.xlu0 %v717_v16 }
 0x22c   :  { %739 = vadd.xlane.f32.xlu0 %v738_v15 }
 0x296   :  { %v726_v55 = vpop.xlane.xlu1 %725  ;;  %v733_v57 = vpop.xlane.xlu2 %732 }
 0x297   :  { %v719_v54 = vpop.xlane.xlu0 %718  ;;  %v727_v59 = vmul.f32 %v726_v55, %v1927_v29  ;;  %v728_v60 = vmul.f32 %v726_v55, %v1929_v30  ;;  %v730_v1 = vmul.f32 %v726_v55, %v1956_v45  ;;  %v734_v50 = vmul.f32 %v733_v57, %v1915_v21 }
 0x298   :  { %v720_v61 = vmul.f32 %v719_v54, %v1919_v23  ;;  %v721_v0 = vmul.f32 %v719_v54, %v1921_v24  ;;  %v723_v8 = vmul.f32 %v719_v54, %v1952_v43  ;;  %v735_v3 = vmul.f32 %v733_v57, %v1917_v22 }
 0x299   :  { %v737_v29 = vmul.f32 %v733_v57, %v1946_v40  ;;  %v736_v49 = vmul.f32 %v733_v57, %v1973_v7  ;;  %v729_v26 = vmul.f32 %v726_v55, %v1982_v14  ;;  %v722_v52 = vmul.f32 %v719_v54, %v1978_v12 }
 0x29a   :  { %v745_v6 = vadd.f32 %v727_v59, %v720_v61  ;;  %v746_v9 = vadd.f32 %v728_v60, %v721_v0  ;;  %v748_v22 = vadd.f32 %v730_v1, %v723_v8  ;;  %v233_v60 = vadd.f32 %v232_v58, %v1990_v36 }
 0x29b   :  { %v747_v59 = vadd.f32 %v729_v26, %v722_v52 }
 0x29f   :  { %v740_v51 = vpop.xlane.xlu0 %739 }
 0x2a0   :  { %v741_v30 = vmul.f32 %v740_v51, %v1923_v25  ;;  %v742_v23 = vmul.f32 %v740_v51, %v1925_v27  ;;  %v744_v24 = vmul.f32 %v740_v51, %v1954_v44  ;;  %v45_v44 = vld [vmem:[%s2386_s0 + $0x20] sm:$0xff]  ;;  %v743_v20 = vmul.f32 %v740_v51, %v1980_v13 }
 0x2a1   :  { %1563 = vmatmul.msk.f32.gmra.mxu2 %vm72_vm5, %v45_v44  ;;  %1574 = vmatmul.msk.f32.gmra.mxu3 %vm72_vm5, %v45_v44 }
 0x2a2   :  { %v749_v21 = vadd.f32 %v741_v30, %v734_v50  ;;  %v750_v31 = vadd.f32 %v742_v23, %v735_v3  ;;  %v752_v33 = vadd.f32 %v744_v24, %v737_v29  ;;  %1541 = vmatmul.msk.f32.gmra.mxu0 %vm72_vm5, %v45_v44  ;;  %1552 = vmatmul.msk.f32.gmra.mxu1 %vm72_vm5, %v45_v44 }
 0x2a3   :  { %v751_v16 = vadd.f32 %v743_v20, %v736_v49 }
 0x2a4   :  { %v753_v34 = vadd.f32 %v749_v21, %v745_v6  ;;  %v754_v19 = vadd.f32 %v750_v31, %v746_v9  ;;  %v756_v37 = vadd.f32 %v752_v33, %v748_v22 }
 0x2a5   :  { %v755_v61 = vadd.f32 %v751_v16, %v747_v59 }
 0x2a6   :  { %v761_v40 = vadd.f32 %v753_v34, %v139_v63  ;;  %v762_v38 = vadd.f32 %v754_v19, %v186_v28  ;;  %v764_v25 = vadd.f32 %v756_v37, %v280_v18 }
 0x2a7   :  { %v763_v57 = vadd.f32 %v755_v61, %v233_v60  ;;  %v2132_v61 = vld [vmem:[#allocation4 + $0x20] sm:$0xff] }
 0x2a8   :  { %v1595_v46 = vmul.f32 -1.442695, %v761_v40  ;;  %v1596_v27 = vmul.f32 -1.442695, %v762_v38  ;;  %v1597_v47 = vmul.f32 -1.442695, %v764_v25 }
 0x2aa   :  { %1676 = vpow2.f32 %v1595_v46 }
 0x2ab   :  { %1678 = vpow2.f32 %v1596_v27 }
 0x2ac   :  { %1680 = vpow2.f32 %v1597_v47 }
 0x2b0   :  { %v1677_v56 = vpop.eup %1676 }
 0x2b1   :  { %v1679_v17 = vpop.eup %1678  ;;  %v768_v39 = vadd.f32 1.0, %v1677_v56 }
 0x2b2   :  { %v1681_v53 = vpop.eup %1680  ;;  %v787_v15 = vadd.f32 1.0, %v1679_v17 }
 0x2b3   :  { %1682 = vrcp.f32 %v768_v39  ;;  %v807_v0 = vadd.f32 1.0, %v1681_v53  ;;  %v778_v50 = vand.u32 2147483647, %v768_v39  ;;  %v780_v3 = vand.u32 2147483648, %v768_v39 }
 0x2b4   :  { %1684 = vrcp.f32 %v787_v15  ;;  %v799_v51 = vand.u32 2147483648, %v787_v15  ;;  %v797_v23 = vand.u32 2147483647, %v787_v15  ;;  %vm774_vm14 = vweird.f32 %v768_v39 }
 0x2b5   :  { %1686 = vrcp.f32 %v807_v0  ;;  %vm793_vm15 = vweird.f32 %v787_v15  ;;  %v781_v28 = vor.u32 1.1754944e-38, %v780_v3  ;;  %vm779_vm2 = vcmp.eq.f32.partialorder %v778_v50, 8.507059e+37  ;;  %v2146_v3 = vld [vmem:[#allocation4 + $0x40] sm:$0xff] }
 0x2b6   :  { %1688 = vtanh.f32 %v763_v57  ;;  %v800_v18 = vor.u32 1.1754944e-38, %v799_v51  ;;  %vm798_vm3 = vcmp.eq.f32.partialorder %v797_v23, 8.507059e+37  ;;  %v819_v46 = vand.u32 2147483648, %v807_v0 }
 0x2b7   :  { %vm813_vm6 = vweird.f32 %v807_v0  ;;  %v817_v27 = vand.u32 2147483647, %v807_v0 }
 0x2b8   :  { %v820_v44 = vor.u32 1.1754944e-38, %v819_v46 }
 0x2b9   :  { %v1683_v7 = vpop.eup %1682  ;;  %vm818_vm8 = vcmp.eq.f32.partialorder %v817_v27, 8.507059e+37 }
 0x2ba   :  { %v1685_v55 = vpop.eup %1684  ;;  %v770_v1 = vmul.f32 %v1683_v7, %v768_v39  ;;  %vm775_vm12 = vweird.f32 %v1683_v7 }
 0x2bb   :  { %v789_v54 = vmul.f32 %v1685_v55, %v787_v15  ;;  %v1687_v2 = vpop.eup %1686  ;;  %vm794_vm13 = vweird.f32 %v1685_v55  ;;  %vm776_vm0 = vmor %vm774_vm14, %vm775_vm12 }
 0x2bc   :  { %v771_v8 = vsub.f32 1.0, %v770_v1  ;;  %v809_v29 = vmul.f32 %v1687_v2, %v807_v0  ;;  %vm795_vm1 = vmor %vm793_vm15, %vm794_vm13  ;;  %v1689_v31 = vpop.eup %1688  ;;  %vm814_vm4 = vweird.f32 %v1687_v2  ;;  %v2141_v1 = vld [vmem:[#allocation4 + $0x8] sm:$0xff] }
 0x2bd   :  { %v790_v32 = vsub.f32 1.0, %v789_v54  ;;  %vm815_vm7 = vmor %vm813_vm6, %vm814_vm4 }
 0x2be   :  { %v772_v63 = vmul.f32 %v1683_v7, %v771_v8  ;;  %v810_v6 = vsub.f32 1.0, %v809_v29 }
 0x2bf   :  { %v791_v30 = vmul.f32 %v1685_v55, %v790_v32 }
 0x2c0   :  { %v773_v24 = vadd.f32 %v1683_v7, %v772_v63  ;;  %v811_v37 = vmul.f32 %v1687_v2, %v810_v6  ;;  %v2149_v63 = vld [vmem:[#allocation4 + $0x48] sm:$0xff] }
 0x2c1   :  { %v792_v9 = vadd.f32 %v1685_v55, %v791_v30 }
 0x2c2   :  { %v777_v21 = vsel %vm776_vm0, %v1683_v7, %v773_v24  ;;  %v812_v25 = vadd.f32 %v1687_v2, %v811_v37  ;;  %v2135_v7 = vld [vmem:[#allocation4 + $0x28] sm:$0xff]  ;;  %v2153_v24 = vld [vmem:[#allocation4 + $0x58] sm:$0xff] }
 0x2c3   :  { %v782_v22 = vsel %vm779_vm2, %v781_v28, %v777_v21  ;;  %v796_v33 = vsel %vm795_vm1, %v1685_v55, %v792_v9  ;;  %v2138_v55 = vld [vmem:[#allocation4] sm:$0xff]  ;;  %v2159_v28 = vld [vmem:[#allocation4 + $0x68] sm:$0xff] }
 0x2c4   :  { %v801_v34 = vsel %vm798_vm3, %v800_v18, %v796_v33  ;;  %v824_v19 = vmul.f32 %v1689_v31, %v782_v22  ;;  %v816_v47 = vsel %vm815_vm7, %v1687_v2, %v812_v25  ;;  %v2162_v18 = vld [vmem:[#allocation4 + $0x78] sm:$0xff] }
 0x2c5   :  { %v823_v40 = vmul.f32 %v801_v34, %v2078_v35  ;;  %v821_v49 = vsel %vm818_vm8, %v820_v44, %v816_v47  ;;  %v1598_v35 = vld [vmem:[%s2390_s4 + $0x18] sm:$0xff] }
 0x2c7   :  { %v2119_v38 = vadd.f32 %v824_v19, %v823_v40 }
 0x2c9   :  { %1690 = vtanh.f32 %v2119_v38 }
 0x2cf   :  { %v1691_v20 = vpop.eup %1690 }
 0x2d0   :  { %v827_v26 = vmul.f32 %v1691_v20, %v821_v49 }
 0x2d2   :  { %v846_v52 = vmul.f32 %v1886_v4, %v827_v26  ;;  %v839_v56 = vmul.f32 %v1900_v11, %v827_v26  ;;  %v832_v17 = vmul.f32 %v1888_v5, %v827_v26  ;;  %v830_v39 = vmul.f32 %v1598_v35, %v827_v26 }
 0x2d3   :  { %v853_v53 = vmul.f32 %v1898_v10, %v827_v26 }
 0x2d4   :  { %847 = vadd.xlane.f32.xlu0 %v846_v52  ;;  %840 = vadd.xlane.f32.xlu2 %v839_v56  ;;  %v2129_v16 = vadd.f32 %v830_v39, %v2088_v48  ;;  %v46_v56 = vld [vmem:[%s2386_s0 + $0x28] sm:$0xff]  ;;  %v2175_v39 = vld [vmem:[#allocation4 + $0x50] sm:$0xff] }
 0x2d5   :  { %833 = vadd.xlane.f32.xlu1 %v832_v17  ;;  %1564 = vmatmul.msk.f32.gmra.mxu2 %vm72_vm5, %v46_v56 }
 0x2d6   :  { %1575 = vmatmul.msk.f32.gmra.mxu3 %vm72_vm5, %v46_v56  ;;  %1542 = vmatmul.msk.f32.gmra.mxu0 %vm72_vm5, %v46_v56 }
 0x2d7   :  { %1553 = vmatmul.msk.f32.gmra.mxu1 %vm72_vm5, %v46_v56 }
 0x2dd   :  { %854 = vadd.xlane.f32.xlu1 %v853_v53 }
 0x31f   :  { %v141_v60 = vpop.f32.mrf.mxu0  ;;  %v188_v32 = vpop.f32.mrf.mxu1 }
 0x320   :  { %v142_v23 = vadd.f32 %v141_v60, %v1948_v41  ;;  %v189_v22 = vadd.f32 %v188_v32, %v1950_v42 }
 0x324   :  { %v282_v50 = vpop.f32.mrf.mxu3 }
 0x325   :  { %v283_v34 = vadd.f32 %v282_v50, %v1966_v62  ;;  %v235_v50 = vpop.f32.mrf.mxu2 }
 0x347   :  { %v841_v58 = vpop.xlane.xlu2 %840  ;;  %v848_v59 = vpop.xlane.xlu0 %847 }
 0x348   :  { %v834_v15 = vpop.xlane.xlu1 %833  ;;  %v842_v0 = vmul.f32 %v2132_v61, %v841_v58  ;;  %v843_v57 = vmul.f32 %v2135_v7, %v841_v58  ;;  %v845_v8 = vmul.f32 %v841_v58, %v1956_v45  ;;  %v849_v51 = vmul.f32 %v2146_v3, %v848_v59  ;;  %v2156_v45 = vld [vmem:[#allocation4 + $0x60] sm:$0xff] }
 0x349   :  { %v835_v48 = vmul.f32 %v2138_v55, %v834_v15  ;;  %v836_v54 = vmul.f32 %v2141_v1, %v834_v15  ;;  %v838_v2 = vmul.f32 %v834_v15, %v1952_v43  ;;  %v850_v29 = vmul.f32 %v2149_v63, %v848_v59 }
 0x34a   :  { %v852_v6 = vmul.f32 %v2153_v24, %v848_v59  ;;  %v851_v53 = vmul.f32 %v2175_v39, %v848_v59  ;;  %v844_v60 = vmul.f32 %v841_v58, %v1982_v14 }
 0x34b   :  { %v860_v31 = vadd.f32 %v842_v0, %v835_v48  ;;  %v861_v33 = vadd.f32 %v843_v57, %v836_v54  ;;  %v863_v40 = vadd.f32 %v845_v8, %v838_v2  ;;  %v837_v0 = vmul.f32 %v834_v15, %v1978_v12 }
 0x350   :  { %v855_v30 = vpop.xlane.xlu1 %854 }
 0x351   :  { %v856_v43 = vmul.f32 %v2156_v45, %v855_v30  ;;  %v857_v9 = vmul.f32 %v2159_v28, %v855_v30  ;;  %v859_v21 = vmul.f32 %v2162_v18, %v855_v30  ;;  %v858_v17 = vmul.f32 %v855_v30, %v1980_v13 }
 0x352   :  { %v236_v13 = vadd.f32 %v235_v50, %v1990_v36 }
 0x353   :  { %v864_v19 = vadd.f32 %v856_v43, %v849_v51  ;;  %v865_v37 = vadd.f32 %v857_v9, %v850_v29  ;;  %v867_v25 = vadd.f32 %v859_v21, %v852_v6  ;;  %v866_v8 = vadd.f32 %v858_v17, %v851_v53 }
 0x354   :  { %v862_v51 = vadd.f32 %v844_v60, %v837_v0 }
 0x355   :  { %v868_v46 = vadd.f32 %v864_v19, %v860_v31  ;;  %v869_v27 = vadd.f32 %v865_v37, %v861_v33  ;;  %v871_v47 = vadd.f32 %v867_v25, %v863_v40 }
 0x356   :  { %v870_v29 = vadd.f32 %v866_v8, %v862_v51 }
 0x357   :  { %v876_v44 = vadd.f32 %v868_v46, %v142_v23  ;;  %v877_v20 = vadd.f32 %v869_v27, %v189_v22  ;;  %v879_v49 = vadd.f32 %v871_v47, %v283_v34 }
 0x358   :  { %v878_v23 = vadd.f32 %v870_v29, %v236_v13 }
 0x359   :  { %v1599_v26 = vmul.f32 -1.442695, %v876_v44  ;;  %v1600_v35 = vmul.f32 -1.442695, %v877_v20  ;;  %v1601_v52 = vmul.f32 -1.442695, %v879_v49 }
 0x35b   :  { %1692 = vpow2.f32 %v1599_v26 }
 0x35c   :  { %1694 = vpow2.f32 %v1600_v35 }
 0x35d   :  { %1696 = vpow2.f32 %v1601_v52 }
 0x361   :  { %v1693_v57 = vpop.eup %1692 }
 0x362   :  { %v1695_v48 = vpop.eup %1694  ;;  %v883_v54 = vadd.f32 1.0, %v1693_v57 }
 0x363   :  { %v1697_v2 = vpop.eup %1696  ;;  %v902_v32 = vadd.f32 1.0, %v1695_v48 }
 0x364   :  { %1698 = vrcp.f32 %v883_v54  ;;  %v922_v30 = vadd.f32 1.0, %v1697_v2  ;;  %v893_v9 = vand.u32 2147483647, %v883_v54  ;;  %v895_v21 = vand.u32 2147483648, %v883_v54 }
 0x365   :  { %1700 = vrcp.f32 %v902_v32  ;;  %v914_v31 = vand.u32 2147483648, %v902_v32  ;;  %v912_v19 = vand.u32 2147483647, %v902_v32  ;;  %vm889_vm11 = vweird.f32 %v883_v54 }
 0x366   :  { %1702 = vrcp.f32 %v922_v30  ;;  %vm908_vm12 = vweird.f32 %v902_v32  ;;  %v896_v25 = vor.u32 1.1754944e-38, %v895_v21  ;;  %vm894_vm15 = vcmp.eq.f32.partialorder %v893_v9, 8.507059e+37  ;;  %v2199_v9 = vld [vmem:[#allocation4 + $0x38] sm:$0xff] }
 0x367   :  { %1704 = vtanh.f32 %v878_v23  ;;  %v915_v27 = vor.u32 1.1754944e-38, %v914_v31  ;;  %vm913_vm0 = vcmp.eq.f32.partialorder %v912_v19, 8.507059e+37  ;;  %v934_v60 = vand.u32 2147483648, %v922_v30  ;;  %v2202_v21 = vld [vmem:[#allocation4 + $0x18] sm:$0xff] }
 0x368   :  { %vm928_vm2 = vweird.f32 %v922_v30  ;;  %v932_v0 = vand.u32 2147483647, %v922_v30 }
 0x369   :  { %v935_v48 = vor.u32 1.1754944e-38, %v934_v60 }
 0x36a   :  { %v1699_v59 = vpop.eup %1698  ;;  %vm933_vm4 = vcmp.eq.f32.partialorder %v932_v0, 8.507059e+37 }
 0x36b   :  { %v1701_v14 = vpop.eup %1700  ;;  %v885_v58 = vmul.f32 %v1699_v59, %v883_v54  ;;  %vm890_vm9 = vweird.f32 %v1699_v59 }
 0x36c   :  { %v904_v12 = vmul.f32 %v1701_v14, %v902_v32  ;;  %v1703_v6 = vpop.eup %1702  ;;  %vm909_vm10 = vweird.f32 %v1701_v14  ;;  %vm891_vm13 = vmor %vm889_vm11, %vm890_vm9 }
 0x36d   :  { %v886_v15 = vsub.f32 1.0, %v885_v58  ;;  %v924_v33 = vmul.f32 %v1703_v6, %v922_v30  ;;  %vm910_vm14 = vmor %vm908_vm12, %vm909_vm10  ;;  %v1705_v44 = vpop.eup %1704  ;;  %vm929_vm1 = vweird.f32 %v1703_v6  ;;  %v144_v58 = vpop.f32.mrf.mxu0 }
 0x36e   :  { %v905_v43 = vsub.f32 1.0, %v904_v12  ;;  %vm930_vm3 = vmor %vm928_vm2, %vm929_vm1 }
 0x36f   :  { %v887_v22 = vmul.f32 %v1699_v59, %v886_v15  ;;  %v925_v40 = vsub.f32 1.0, %v924_v33  ;;  %v285_v33 = vpop.f32.mrf.mxu3 }
 0x370   :  { %v906_v34 = vmul.f32 %v1701_v14, %v905_v43 }
 0x371   :  { %v888_v37 = vadd.f32 %v1699_v59, %v887_v22  ;;  %v926_v52 = vmul.f32 %v1703_v6, %v925_v40  ;;  %v191_v22 = vpop.f32.mrf.mxu1  ;;  %v145_v40 = vadd.f32 %v144_v58, %v1948_v41  ;;  %v2225_v58 = vld [vmem:[#allocation4 + $0x30] sm:$0xff] }
 0x372   :  { %v907_v46 = vadd.f32 %v1701_v14, %v906_v34 }
 0x373   :  { %v892_v47 = vsel %vm891_vm13, %v1699_v59, %v888_v37  ;;  %v927_v53 = vadd.f32 %v1703_v6, %v926_v52 }
 0x374   :  { %v897_v20 = vsel %vm894_vm15, %v896_v25, %v892_v47  ;;  %v911_v49 = vsel %vm910_vm14, %v1701_v14, %v907_v46 }
 0x375   :  { %v916_v26 = vsel %vm913_vm0, %v915_v27, %v911_v49  ;;  %v939_v35 = vmul.f32 %v1705_v44, %v897_v20  ;;  %v931_v57 = vsel %vm930_vm3, %v1703_v6, %v927_v53  ;;  %v192_v20 = vadd.f32 %v191_v22, %v1950_v42 }
 0x376   :  { %v938_v56 = vmul.f32 %v916_v26, %v2119_v38  ;;  %v936_v8 = vsel %vm933_vm4, %v935_v48, %v931_v57  ;;  %v1602_v38 = vld [vmem:[%s2390_s4 + $0x20] sm:$0xff]  ;;  %v286_v26 = vadd.f32 %v285_v33, %v1966_v62 }
 0x378   :  { %v2182_v17 = vadd.f32 %v939_v35, %v938_v56 }
 0x37a   :  { %1706 = vtanh.f32 %v2182_v17 }
 0x380   :  { %v1707_v54 = vpop.eup %1706 }
 0x381   :  { %v942_v2 = vmul.f32 %v1707_v54, %v936_v8 }
 0x383   :  { %v961_v32 = vmul.f32 %v1886_v4, %v942_v2  ;;  %v954_v50 = vmul.f32 %v1900_v11, %v942_v2  ;;  %v947_v51 = vmul.f32 %v1888_v5, %v942_v2  ;;  %v945_v13 = vmul.f32 %v1602_v38, %v942_v2 }
 0x384   :  { %v968_v30 = vmul.f32 %v1898_v10, %v942_v2 }
 0x385   :  { %962 = vadd.xlane.f32.xlu1 %v961_v32  ;;  %955 = vadd.xlane.f32.xlu0 %v954_v50  ;;  %v2192_v29 = vadd.f32 %v945_v13, %v2129_v16  ;;  %v47_v50 = vld [vmem:[%s2386_s0 + $0x30] sm:$0xff] }
 0x386   :  { %948 = vadd.xlane.f32.xlu2 %v947_v51  ;;  %1565 = vmatmul.msk.f32.gmra.mxu2 %vm72_vm5, %v47_v50  ;;  %v2221_v51 = vld [vmem:[#allocation4 + $0x70] sm:$0xff] }
 0x387   :  { %1576 = vmatmul.msk.f32.gmra.mxu3 %vm72_vm5, %v47_v50  ;;  %1543 = vmatmul.msk.f32.gmra.mxu0 %vm72_vm5, %v47_v50 }
 0x388   :  { %1554 = vmatmul.msk.f32.gmra.mxu1 %vm72_vm5, %v47_v50 }
 0x38e   :  { %969 = vadd.xlane.f32.xlu2 %v968_v30 }
 0x3f8   :  { %v956_v23 = vpop.xlane.xlu0 %955  ;;  %v963_v14 = vpop.xlane.xlu1 %962 }
 0x3f9   :  { %v949_v59 = vpop.xlane.xlu2 %948  ;;  %v957_v12 = vmul.f32 %v2132_v61, %v956_v23  ;;  %v958_v15 = vmul.f32 %v2135_v7, %v956_v23  ;;  %v960_v16 = vmul.f32 %v2199_v9, %v956_v23  ;;  %v964_v34 = vmul.f32 %v2146_v3, %v963_v14 }
 0x3fa   :  { %v950_v6 = vmul.f32 %v2138_v55, %v949_v59  ;;  %v951_v43 = vmul.f32 %v2141_v1, %v949_v59  ;;  %v953_v31 = vmul.f32 %v2202_v21, %v949_v59  ;;  %v965_v19 = vmul.f32 %v2149_v63, %v963_v14 }
 0x3fb   :  { %v967_v25 = vmul.f32 %v2153_v24, %v963_v14  ;;  %v966_v30 = vmul.f32 %v2175_v39, %v963_v14 }
 0x3fc   :  { %v975_v44 = vadd.f32 %v957_v12, %v950_v6  ;;  %v976_v49 = vadd.f32 %v958_v15, %v951_v43  ;;  %v978_v56 = vadd.f32 %v960_v16, %v953_v31  ;;  %v959_v12 = vmul.f32 %v2225_v58, %v956_v23  ;;  %v2228_v15 = vld [vmem:[#allocation4 + $0x10] sm:$0xff] }
 0x3fd   :  { %v952_v6 = vmul.f32 %v2228_v15, %v949_v59 }
 0x401   :  { %v970_v37 = vpop.xlane.xlu2 %969 }
 0x402   :  { %v971_v46 = vmul.f32 %v2156_v45, %v970_v37  ;;  %v972_v27 = vmul.f32 %v2159_v28, %v970_v37  ;;  %v974_v47 = vmul.f32 %v2162_v18, %v970_v37  ;;  %v973_v13 = vmul.f32 %v2221_v51, %v970_v37 }
 0x404   :  { %v979_v35 = vadd.f32 %v971_v46, %v964_v34  ;;  %v980_v52 = vadd.f32 %v972_v27, %v965_v19  ;;  %v982_v53 = vadd.f32 %v974_v47, %v967_v25  ;;  %v981_v22 = vadd.f32 %v973_v13, %v966_v30  ;;  %v238_v19 = vpop.f32.mrf.mxu2 }
 0x405   :  { %v239_v14 = vadd.f32 %v238_v19, %v1990_v36 }
 0x406   :  { %v983_v60 = vadd.f32 %v979_v35, %v975_v44  ;;  %v984_v0 = vadd.f32 %v980_v52, %v976_v49  ;;  %v986_v57 = vadd.f32 %v982_v53, %v978_v56 }
 0x408   :  { %v991_v48 = vadd.f32 %v983_v60, %v145_v40  ;;  %v992_v54 = vadd.f32 %v984_v0, %v192_v20  ;;  %v994_v8 = vadd.f32 %v986_v57, %v286_v26  ;;  %v977_v40 = vadd.f32 %v959_v12, %v952_v6 }
 0x40a   :  { %v1603_v2 = vmul.f32 -1.442695, %v991_v48  ;;  %v1604_v38 = vmul.f32 -1.442695, %v992_v54  ;;  %v1605_v32 = vmul.f32 -1.442695, %v994_v8  ;;  %v985_v37 = vadd.f32 %v981_v22, %v977_v40 }
 0x40c   :  { %1708 = vpow2.f32 %v1603_v2  ;;  %v993_v46 = vadd.f32 %v985_v37, %v239_v14 }
 0x40d   :  { %1710 = vpow2.f32 %v1604_v38 }
 0x40e   :  { %1712 = vpow2.f32 %v1605_v32 }
 0x412   :  { %v1709_v43 = vpop.eup %1708 }
 0x413   :  { %v1711_v16 = vpop.eup %1710  ;;  %v998_v31 = vadd.f32 1.0, %v1709_v43 }
 0x414   :  { %v1713_v33 = vpop.eup %1712  ;;  %v1017_v34 = vadd.f32 1.0, %v1711_v16 }
 0x415   :  { %1714 = vrcp.f32 %v998_v31  ;;  %v1037_v25 = vadd.f32 1.0, %v1713_v33  ;;  %v1008_v26 = vand.u32 2147483647, %v998_v31  ;;  %v1010_v35 = vand.u32 2147483648, %v998_v31 }
 0x416   :  { %1716 = vrcp.f32 %v1017_v34  ;;  %v1029_v52 = vand.u32 2147483648, %v1017_v34  ;;  %v1027_v0 = vand.u32 2147483647, %v1017_v34  ;;  %vm1004_vm8 = vweird.f32 %v998_v31 }
 0x417   :  { %1718 = vrcp.f32 %v1037_v25  ;;  %vm1023_vm9 = vweird.f32 %v1017_v34  ;;  %v1011_v54 = vor.u32 1.1754944e-38, %v1010_v35  ;;  %vm1009_vm12 = vcmp.eq.f32.partialorder %v1008_v26, 8.507059e+37  ;;  %v147_v26 = vpop.f32.mrf.mxu0 }
 0x418   :  { %1720 = vtanh.f32 %v993_v46  ;;  %v1030_v2 = vor.u32 1.1754944e-38, %v1029_v52  ;;  %vm1028_vm13 = vcmp.eq.f32.partialorder %v1027_v0, 8.507059e+37  ;;  %v1049_v22 = vand.u32 2147483648, %v1037_v25  ;;  %v194_v0 = vpop.f32.mrf.mxu1 }
 0x419   :  { %vm1043_vm15 = vweird.f32 %v1037_v25  ;;  %v1047_v33 = vand.u32 2147483647, %v1037_v25 }
 0x41a   :  { %v1050_v19 = vor.u32 1.1754944e-38, %v1049_v22 }
 0x41b   :  { %v1715_v23 = vpop.eup %1714  ;;  %vm1048_vm1 = vcmp.eq.f32.partialorder %v1047_v33, 8.507059e+37 }
 0x41c   :  { %v1717_v27 = vpop.eup %1716  ;;  %v1000_v47 = vmul.f32 %v1715_v23, %v998_v31  ;;  %vm1005_vm6 = vweird.f32 %v1715_v23 }
 0x41d   :  { %v1019_v59 = vmul.f32 %v1717_v27, %v1017_v34  ;;  %v1719_v20 = vpop.eup %1718  ;;  %vm1024_vm7 = vweird.f32 %v1717_v27  ;;  %vm1006_vm10 = vmor %vm1004_vm8, %vm1005_vm6 }
 0x41e   :  { %v1001_v44 = vsub.f32 1.0, %v1000_v47  ;;  %v1039_v53 = vmul.f32 %v1719_v20, %v1037_v25  ;;  %vm1025_vm11 = vmor %vm1023_vm9, %vm1024_vm7  ;;  %v1721_v32 = vpop.eup %1720  ;;  %vm1044_vm14 = vweird.f32 %v1719_v20 }
 0x41f   :  { %v1020_v49 = vsub.f32 1.0, %v1019_v59  ;;  %vm1045_vm0 = vmor %vm1043_vm15, %vm1044_vm14 }
 0x420   :  { %v1002_v56 = vmul.f32 %v1715_v23, %v1001_v44  ;;  %v1040_v48 = vsub.f32 1.0, %v1039_v53 }
 0x421   :  { %v1021_v60 = vmul.f32 %v1717_v27, %v1020_v49 }
 0x422   :  { %v1003_v57 = vadd.f32 %v1715_v23, %v1002_v56  ;;  %v1041_v6 = vmul.f32 %v1719_v20, %v1040_v48 }
 0x423   :  { %v1022_v8 = vadd.f32 %v1717_v27, %v1021_v60 }
 0x424   :  { %v1007_v38 = vsel %vm1006_vm10, %v1715_v23, %v1003_v57  ;;  %v1042_v31 = vadd.f32 %v1719_v20, %v1041_v6  ;;  %v288_v57 = vpop.f32.mrf.mxu3 }
 0x425   :  { %v1012_v50 = vsel %vm1009_vm12, %v1011_v54, %v1007_v38  ;;  %v1026_v13 = vsel %vm1025_vm11, %v1717_v27, %v1022_v8 }
 0x426   :  { %v1031_v30 = vsel %vm1028_vm13, %v1030_v2, %v1026_v13  ;;  %v1054_v12 = vmul.f32 %v1721_v32, %v1012_v50  ;;  %v1046_v34 = vsel %vm1045_vm0, %v1719_v20, %v1042_v31  ;;  %v148_v2 = vadd.f32 %v147_v26, %v1948_v41 }
 0x427   :  { %v1053_v43 = vmul.f32 %v1031_v30, %v2182_v17  ;;  %v1051_v14 = vsel %vm1048_vm1, %v1050_v19, %v1046_v34  ;;  %v1606_v17 = vld [vmem:[%s2390_s4 + $0x28] sm:$0xff] }
 0x429   :  { %v2233_v16 = vadd.f32 %v1054_v12, %v1053_v43  ;;  %v195_v12 = vadd.f32 %v194_v0, %v1950_v42  ;;  %v289_v43 = vadd.f32 %v288_v57, %v1966_v62 }
 0x42b   :  { %1722 = vtanh.f32 %v2233_v16 }
 0x431   :  { %v1723_v40 = vpop.eup %1722 }
 0x432   :  { %v1057_v37 = vmul.f32 %v1723_v40, %v1051_v14 }
 0x434   :  { %v1076_v23 = vmul.f32 %v1886_v4, %v1057_v37  ;;  %v1069_v46 = vmul.f32 %v1900_v11, %v1057_v37  ;;  %v1062_v27 = vmul.f32 %v1888_v5, %v1057_v37  ;;  %v1060_v47 = vmul.f32 %v1606_v17, %v1057_v37 }
 0x435   :  { %v1083_v59 = vmul.f32 %v1898_v10, %v1057_v37 }
 0x436   :  { %1077 = vadd.xlane.f32.xlu2 %v1076_v23  ;;  %1070 = vadd.xlane.f32.xlu1 %v1069_v46  ;;  %v2243_v25 = vadd.f32 %v1060_v47, %v2192_v29 }
 0x437   :  { %1063 = vadd.xlane.f32.xlu0 %v1062_v27 }
 0x43f   :  { %1084 = vadd.xlane.f32.xlu0 %v1083_v59  ;;  %v48_v59 = vld [vmem:[%s2386_s0 + $0x38] sm:$0xff] }
 0x440   :  { %1566 = vmatmul.msk.f32.gmra.mxu2 %vm72_vm5, %v48_v59  ;;  %1577 = vmatmul.msk.f32.gmra.mxu3 %vm72_vm5, %v48_v59 }
 0x441   :  { %1544 = vmatmul.msk.f32.gmra.mxu0 %vm72_vm5, %v48_v59  ;;  %1555 = vmatmul.msk.f32.gmra.mxu1 %vm72_vm5, %v48_v59 }
 0x4a9   :  { %v1071_v20 = vpop.xlane.xlu1 %1070  ;;  %v1078_v49 = vpop.xlane.xlu2 %1077 }
 0x4aa   :  { %v1064_v44 = vpop.xlane.xlu0 %1063  ;;  %v1072_v35 = vmul.f32 %v2132_v61, %v1071_v20  ;;  %v1073_v52 = vmul.f32 %v2135_v7, %v1071_v20  ;;  %v1075_v60 = vmul.f32 %v2199_v9, %v1071_v20  ;;  %v1079_v48 = vmul.f32 %v2146_v3, %v1078_v49 }
 0x4ab   :  { %v1065_v56 = vmul.f32 %v2138_v55, %v1064_v44  ;;  %v1066_v53 = vmul.f32 %v2141_v1, %v1064_v44  ;;  %v1068_v29 = vmul.f32 %v2202_v21, %v1064_v44  ;;  %v1080_v54 = vmul.f32 %v2149_v63, %v1078_v49 }
 0x4ac   :  { %v1082_v38 = vmul.f32 %v2153_v24, %v1078_v49 }
 0x4ad   :  { %v1090_v30 = vadd.f32 %v1072_v35, %v1065_v56  ;;  %v1091_v6 = vadd.f32 %v1073_v52, %v1066_v53  ;;  %v1093_v33 = vadd.f32 %v1075_v60, %v1068_v29  ;;  %v1081_v35 = vmul.f32 %v2175_v39, %v1078_v49 }
 0x4ae   :  { %v1074_v52 = vmul.f32 %v2225_v58, %v1071_v20  ;;  %v1067_v56 = vmul.f32 %v2228_v15, %v1064_v44 }
 0x4b2   :  { %v1085_v8 = vpop.xlane.xlu0 %1084 }
 0x4b3   :  { %v1086_v32 = vmul.f32 %v2156_v45, %v1085_v8  ;;  %v1087_v50 = vmul.f32 %v2159_v28, %v1085_v8  ;;  %v1089_v13 = vmul.f32 %v2162_v18, %v1085_v8  ;;  %v1088_v26 = vmul.f32 %v2221_v51, %v1085_v8 }
 0x4b5   :  { %v1094_v31 = vadd.f32 %v1086_v32, %v1079_v48  ;;  %v1095_v22 = vadd.f32 %v1087_v50, %v1080_v54  ;;  %v1097_v34 = vadd.f32 %v1089_v13, %v1082_v38  ;;  %v1096_v0 = vadd.f32 %v1088_v26, %v1081_v35  ;;  %v241_v54 = vpop.f32.mrf.mxu2 }
 0x4b6   :  { %v242_v38 = vadd.f32 %v241_v54, %v1990_v36 }
 0x4b7   :  { %v1098_v19 = vadd.f32 %v1094_v31, %v1090_v30  ;;  %v1099_v40 = vadd.f32 %v1095_v22, %v1091_v6  ;;  %v1101_v14 = vadd.f32 %v1097_v34, %v1093_v33 }
 0x4b9   :  { %v1106_v37 = vadd.f32 %v1098_v19, %v148_v2  ;;  %v1107_v17 = vadd.f32 %v1099_v40, %v195_v12  ;;  %v1109_v23 = vadd.f32 %v1101_v14, %v289_v43  ;;  %v1092_v2 = vadd.f32 %v1074_v52, %v1067_v56 }
 0x4bb   :  { %v1607_v46 = vmul.f32 -1.442695, %v1106_v37  ;;  %v1608_v27 = vmul.f32 -1.442695, %v1107_v17  ;;  %v1609_v47 = vmul.f32 -1.442695, %v1109_v23  ;;  %v1100_v32 = vadd.f32 %v1096_v0, %v1092_v2 }
 0x4bd   :  { %1724 = vpow2.f32 %v1607_v46  ;;  %v1108_v50 = vadd.f32 %v1100_v32, %v242_v38 }
 0x4be   :  { %1726 = vpow2.f32 %v1608_v27 }
 0x4bf   :  { %1728 = vpow2.f32 %v1609_v47 }
 0x4c3   :  { %v1725_v53 = vpop.eup %1724 }
 0x4c4   :  { %v1727_v60 = vpop.eup %1726  ;;  %v1113_v29 = vadd.f32 1.0, %v1725_v53 }
 0x4c5   :  { %v1729_v57 = vpop.eup %1728  ;;  %v1132_v48 = vadd.f32 1.0, %v1727_v60 }
 0x4c6   :  { %1730 = vrcp.f32 %v1113_v29  ;;  %v1152_v8 = vadd.f32 1.0, %v1729_v57  ;;  %v1123_v43 = vand.u32 2147483647, %v1113_v29  ;;  %v1125_v31 = vand.u32 2147483648, %v1113_v29 }
 0x4c7   :  { %1732 = vrcp.f32 %v1132_v48  ;;  %v1144_v22 = vand.u32 2147483648, %v1132_v48  ;;  %v1142_v40 = vand.u32 2147483647, %v1132_v48  ;;  %vm1119_vm4 = vweird.f32 %v1113_v29 }
 0x4c8   :  { %1734 = vrcp.f32 %v1152_v8  ;;  %vm1138_vm6 = vweird.f32 %v1132_v48  ;;  %v1126_v17 = vor.u32 1.1754944e-38, %v1125_v31  ;;  %vm1124_vm9 = vcmp.eq.f32.partialorder %v1123_v43, 8.507059e+37  ;;  %v150_v43 = vpop.f32.mrf.mxu0 }
 0x4c9   :  { %1736 = vtanh.f32 %v1108_v50  ;;  %v1145_v46 = vor.u32 1.1754944e-38, %v1144_v22  ;;  %vm1143_vm10 = vcmp.eq.f32.partialorder %v1142_v40, 8.507059e+37  ;;  %v1164_v0 = vand.u32 2147483648, %v1152_v8  ;;  %v197_v40 = vpop.f32.mrf.mxu1 }
 0x4ca   :  { %vm1158_vm12 = vweird.f32 %v1152_v8  ;;  %v1162_v57 = vand.u32 2147483647, %v1152_v8 }
 0x4cb   :  { %v1165_v54 = vor.u32 1.1754944e-38, %v1164_v0 }
 0x4cc   :  { %v1731_v49 = vpop.eup %1730  ;;  %vm1163_vm14 = vcmp.eq.f32.partialorder %v1162_v57, 8.507059e+37 }
 0x4cd   :  { %v1733_v20 = vpop.eup %1732  ;;  %v1115_v13 = vmul.f32 %v1731_v49, %v1113_v29  ;;  %vm1120_vm2 = vweird.f32 %v1731_v49 }
 0x4ce   :  { %v1134_v44 = vmul.f32 %v1733_v20, %v1132_v48  ;;  %v1735_v12 = vpop.eup %1734  ;;  %vm1139_vm3 = vweird.f32 %v1733_v20  ;;  %vm1121_vm7 = vmor %vm1119_vm4, %vm1120_vm2 }
 0x4cf   :  { %v1116_v30 = vsub.f32 1.0, %v1115_v13  ;;  %v1154_v34 = vmul.f32 %v1735_v12, %v1152_v8  ;;  %vm1140_vm8 = vmor %vm1138_vm6, %vm1139_vm3  ;;  %v1737_v47 = vpop.eup %1736  ;;  %vm1159_vm11 = vweird.f32 %v1735_v12 }
 0x4d0   :  { %v1135_v6 = vsub.f32 1.0, %v1134_v44  ;;  %vm1160_vm13 = vmor %vm1158_vm12, %vm1159_vm11 }
 0x4d1   :  { %v1117_v33 = vmul.f32 %v1731_v49, %v1116_v30  ;;  %v1155_v37 = vsub.f32 1.0, %v1154_v34 }
 0x4d2   :  { %v1136_v19 = vmul.f32 %v1733_v20, %v1135_v6 }
 0x4d3   :  { %v1118_v14 = vadd.f32 %v1731_v49, %v1117_v33  ;;  %v1156_v56 = vmul.f32 %v1735_v12, %v1155_v37 }
 0x4d4   :  { %v1137_v23 = vadd.f32 %v1733_v20, %v1136_v19 }
 0x4d5   :  { %v1122_v27 = vsel %vm1121_vm7, %v1731_v49, %v1118_v14  ;;  %v1157_v29 = vadd.f32 %v1735_v12, %v1156_v56  ;;  %v291_v14 = vpop.f32.mrf.mxu3 }
 0x4d6   :  { %v1127_v59 = vsel %vm1124_vm9, %v1126_v17, %v1122_v27  ;;  %v1141_v26 = vsel %vm1140_vm8, %v1733_v20, %v1137_v23 }
 0x4d7   :  { %v1146_v35 = vsel %vm1143_vm10, %v1145_v46, %v1141_v26  ;;  %v1169_v52 = vmul.f32 %v1737_v47, %v1127_v59  ;;  %v1161_v48 = vsel %vm1160_vm13, %v1735_v12, %v1157_v29  ;;  %v151_v46 = vadd.f32 %v150_v43, %v1948_v41 }
 0x4d8   :  { %v1168_v53 = vmul.f32 %v1146_v35, %v2233_v16  ;;  %v1166_v38 = vsel %vm1163_vm14, %v1165_v54, %v1161_v48  ;;  %v1610_v16 = vld [vmem:[%s2390_s4 + $0x30] sm:$0xff] }
 0x4da   :  { %v2274_v60 = vadd.f32 %v1169_v52, %v1168_v53  ;;  %v198_v52 = vadd.f32 %v197_v40, %v1950_v42  ;;  %v292_v53 = vadd.f32 %v291_v14, %v1966_v62 }
 0x4dc   :  { %1738 = vtanh.f32 %v2274_v60 }
 0x4e2   :  { %v1739_v2 = vpop.eup %1738 }
 0x4e3   :  { %v1172_v32 = vmul.f32 %v1739_v2, %v1166_v38 }
 0x4e5   :  { %v1191_v49 = vmul.f32 %v1886_v4, %v1172_v32  ;;  %v1184_v50 = vmul.f32 %v1900_v11, %v1172_v32  ;;  %v1177_v20 = vmul.f32 %v1888_v5, %v1172_v32  ;;  %v1175_v13 = vmul.f32 %v1610_v16, %v1172_v32 }
 0x4e6   :  { %v1198_v44 = vmul.f32 %v1898_v10, %v1172_v32 }
 0x4e7   :  { %1192 = vadd.xlane.f32.xlu0 %v1191_v49  ;;  %1185 = vadd.xlane.f32.xlu2 %v1184_v50  ;;  %v2284_v8 = vadd.f32 %v1175_v13, %v2243_v25 }
 0x4e8   :  { %1178 = vadd.xlane.f32.xlu1 %v1177_v20 }
 0x4f0   :  { %1199 = vadd.xlane.f32.xlu1 %v1198_v44  ;;  %v49_v44 = vld [vmem:[%s2386_s0 + $0x40] sm:$0xff] }
 0x4f1   :  { %1567 = vmatmul.msk.f32.gmra.mxu2 %vm72_vm5, %v49_v44  ;;  %1578 = vmatmul.msk.f32.gmra.mxu3 %vm72_vm5, %v49_v44 }
 0x4f2   :  { %1545 = vmatmul.msk.f32.gmra.mxu0 %vm72_vm5, %v49_v44  ;;  %1556 = vmatmul.msk.f32.gmra.mxu1 %vm72_vm5, %v49_v44 }
 0x55a   :  { %v1186_v12 = vpop.xlane.xlu2 %1185  ;;  %v1193_v6 = vpop.xlane.xlu0 %1192 }
 0x55b   :  { %v1179_v30 = vpop.xlane.xlu1 %1178  ;;  %v1187_v31 = vmul.f32 %v2132_v61, %v1186_v12  ;;  %v1188_v22 = vmul.f32 %v2135_v7, %v1186_v12  ;;  %v1190_v19 = vmul.f32 %v2199_v9, %v1186_v12  ;;  %v1194_v37 = vmul.f32 %v2146_v3, %v1193_v6 }
 0x55c   :  { %v1180_v33 = vmul.f32 %v2138_v55, %v1179_v30  ;;  %v1181_v34 = vmul.f32 %v2141_v1, %v1179_v30  ;;  %v1183_v25 = vmul.f32 %v2202_v21, %v1179_v30  ;;  %v1195_v17 = vmul.f32 %v2149_v63, %v1193_v6 }
 0x55d   :  { %v1197_v27 = vmul.f32 %v2153_v24, %v1193_v6 }
 0x55e   :  { %v1205_v35 = vadd.f32 %v1187_v31, %v1180_v33  ;;  %v1206_v56 = vadd.f32 %v1188_v22, %v1181_v34  ;;  %v1208_v57 = vadd.f32 %v1190_v19, %v1183_v25  ;;  %v1196_v31 = vmul.f32 %v2175_v39, %v1193_v6 }
 0x55f   :  { %v1189_v22 = vmul.f32 %v2225_v58, %v1186_v12  ;;  %v1182_v33 = vmul.f32 %v2228_v15, %v1179_v30 }
 0x563   :  { %v1200_v23 = vpop.xlane.xlu1 %1199 }
 0x564   :  { %v1201_v47 = vmul.f32 %v2156_v45, %v1200_v23  ;;  %v1202_v59 = vmul.f32 %v2159_v28, %v1200_v23  ;;  %v1204_v26 = vmul.f32 %v2162_v18, %v1200_v23  ;;  %v1203_v43 = vmul.f32 %v2221_v51, %v1200_v23 }
 0x566   :  { %v1209_v29 = vadd.f32 %v1201_v47, %v1194_v37  ;;  %v1210_v0 = vadd.f32 %v1202_v59, %v1195_v17  ;;  %v1212_v48 = vadd.f32 %v1204_v26, %v1197_v27  ;;  %v1211_v40 = vadd.f32 %v1203_v43, %v1196_v31  ;;  %v244_v17 = vpop.f32.mrf.mxu2 }
 0x567   :  { %v245_v27 = vadd.f32 %v244_v17, %v1990_v36 }
 0x568   :  { %v1213_v54 = vadd.f32 %v1209_v29, %v1205_v35  ;;  %v1214_v2 = vadd.f32 %v1210_v0, %v1206_v56  ;;  %v1216_v38 = vadd.f32 %v1212_v48, %v1208_v57 }
 0x56a   :  { %v1221_v32 = vadd.f32 %v1213_v54, %v151_v46  ;;  %v1222_v16 = vadd.f32 %v1214_v2, %v198_v52  ;;  %v1224_v49 = vadd.f32 %v1216_v38, %v292_v53  ;;  %v1207_v46 = vadd.f32 %v1189_v22, %v1182_v33 }
 0x56c   :  { %v1611_v50 = vmul.f32 -1.442695, %v1221_v32  ;;  %v1612_v20 = vmul.f32 -1.442695, %v1222_v16  ;;  %v1613_v13 = vmul.f32 -1.442695, %v1224_v49  ;;  %v1215_v47 = vadd.f32 %v1211_v40, %v1207_v46 }
 0x56e   :  { %1740 = vpow2.f32 %v1611_v50  ;;  %v1223_v59 = vadd.f32 %v1215_v47, %v245_v27 }
 0x56f   :  { %1742 = vpow2.f32 %v1612_v20 }
 0x570   :  { %1744 = vpow2.f32 %v1613_v13 }
 0x574   :  { %v1741_v34 = vpop.eup %1740 }
 0x575   :  { %v1743_v19 = vpop.eup %1742  ;;  %v1228_v25 = vadd.f32 1.0, %v1741_v34 }
 0x576   :  { %v1745_v14 = vpop.eup %1744  ;;  %v1247_v37 = vadd.f32 1.0, %v1743_v19 }
 0x577   :  { %1746 = vrcp.f32 %v1228_v25  ;;  %v1267_v23 = vadd.f32 1.0, %v1745_v14  ;;  %v1238_v53 = vand.u32 2147483647, %v1228_v25  ;;  %v1240_v29 = vand.u32 2147483648, %v1228_v25 }
 0x578   :  { %1748 = vrcp.f32 %v1247_v37  ;;  %v1259_v0 = vand.u32 2147483648, %v1247_v37  ;;  %v1257_v2 = vand.u32 2147483647, %v1247_v37  ;;  %vm1234_vm1 = vweird.f32 %v1228_v25 }
 0x579   :  { %1750 = vrcp.f32 %v1267_v23  ;;  %vm1253_vm2 = vweird.f32 %v1247_v37  ;;  %v1241_v16 = vor.u32 1.1754944e-38, %v1240_v29  ;;  %vm1239_vm6 = vcmp.eq.f32.partialorder %v1238_v53, 8.507059e+37  ;;  %v153_v53 = vpop.f32.mrf.mxu0 }
 0x57a   :  { %1752 = vtanh.f32 %v1223_v59  ;;  %v1260_v50 = vor.u32 1.1754944e-38, %v1259_v0  ;;  %vm1258_vm7 = vcmp.eq.f32.partialorder %v1257_v2, 8.507059e+37  ;;  %v1279_v40 = vand.u32 2147483648, %v1267_v23  ;;  %v200_v2 = vpop.f32.mrf.mxu1 }
 0x57b   :  { %vm1273_vm9 = vweird.f32 %v1267_v23  ;;  %v1277_v14 = vand.u32 2147483647, %v1267_v23 }
 0x57c   :  { %v1280_v17 = vor.u32 1.1754944e-38, %v1279_v40 }
 0x57d   :  { %v1747_v6 = vpop.eup %1746  ;;  %vm1278_vm11 = vcmp.eq.f32.partialorder %v1277_v14, 8.507059e+37 }
 0x57e   :  { %v1749_v12 = vpop.eup %1748  ;;  %v1230_v26 = vmul.f32 %v1747_v6, %v1228_v25  ;;  %vm1235_vm15 = vweird.f32 %v1747_v6 }
 0x57f   :  { %v1249_v30 = vmul.f32 %v1749_v12, %v1247_v37  ;;  %v1751_v52 = vpop.eup %1750  ;;  %vm1254_vm0 = vweird.f32 %v1749_v12  ;;  %vm1236_vm3 = vmor %vm1234_vm1, %vm1235_vm15 }
 0x580   :  { %v1231_v35 = vsub.f32 1.0, %v1230_v26  ;;  %v1269_v48 = vmul.f32 %v1751_v52, %v1267_v23  ;;  %vm1255_vm4 = vmor %vm1253_vm2, %vm1254_vm0  ;;  %v1753_v13 = vpop.eup %1752  ;;  %vm1274_vm8 = vweird.f32 %v1751_v52 }
 0x581   :  { %v1250_v56 = vsub.f32 1.0, %v1249_v30  ;;  %vm1275_vm10 = vmor %vm1273_vm9, %vm1274_vm8 }
 0x582   :  { %v1232_v57 = vmul.f32 %v1747_v6, %v1231_v35  ;;  %v1270_v32 = vsub.f32 1.0, %v1269_v48 }
 0x583   :  { %v1251_v54 = vmul.f32 %v1749_v12, %v1250_v56 }
 0x584   :  { %v1233_v38 = vadd.f32 %v1747_v6, %v1232_v57  ;;  %v1271_v33 = vmul.f32 %v1751_v52, %v1270_v32 }
 0x585   :  { %v1252_v49 = vadd.f32 %v1749_v12, %v1251_v54 }
 0x586   :  { %v1237_v20 = vsel %vm1236_vm3, %v1747_v6, %v1233_v38  ;;  %v1272_v25 = vadd.f32 %v1751_v52, %v1271_v33  ;;  %v294_v38 = vpop.f32.mrf.mxu3 }
 0x587   :  { %v1242_v44 = vsel %vm1239_vm6, %v1241_v16, %v1237_v20  ;;  %v1256_v43 = vsel %vm1255_vm4, %v1749_v12, %v1252_v49 }
 0x588   :  { %v1261_v31 = vsel %vm1258_vm7, %v1260_v50, %v1256_v43  ;;  %v1284_v22 = vmul.f32 %v1753_v13, %v1242_v44  ;;  %v1276_v37 = vsel %vm1275_vm10, %v1751_v52, %v1272_v25  ;;  %v154_v50 = vadd.f32 %v153_v53, %v1948_v41  ;;  %v247_v53 = vpop.f32.mrf.mxu2 }
 0x589   :  { %v1283_v34 = vmul.f32 %v1261_v31, %v2274_v60  ;;  %v1281_v27 = vsel %vm1278_vm11, %v1280_v17, %v1276_v37  ;;  %v1614_v60 = vld [vmem:[%s2390_s4 + $0x38] sm:$0xff]  ;;  %v201_v13 = vadd.f32 %v200_v2, %v1950_v42  ;;  %v295_v43 = vadd.f32 %v294_v38, %v1966_v62 }
 0x58b   :  { %v2315_v19 = vadd.f32 %v1284_v22, %v1283_v34 }
 0x58d   :  { %1754 = vtanh.f32 %v2315_v19 }
 0x593   :  { %v1755_v46 = vpop.eup %1754 }
 0x594   :  { %v1287_v47 = vmul.f32 %v1755_v46, %v1281_v27 }
 0x596   :  { %v1306_v6 = vmul.f32 %v1886_v4, %v1287_v47  ;;  %v1299_v59 = vmul.f32 %v1900_v11, %v1287_v47  ;;  %v1292_v12 = vmul.f32 %v1888_v5, %v1287_v47  ;;  %v1290_v26 = vmul.f32 %v1614_v60, %v1287_v47 }
 0x597   :  { %v1313_v30 = vmul.f32 %v1898_v10, %v1287_v47 }
 0x598   :  { %1307 = vadd.xlane.f32.xlu1 %v1306_v6  ;;  %1300 = vadd.xlane.f32.xlu0 %v1299_v59  ;;  %v2325_v23 = vadd.f32 %v1290_v26, %v2284_v8 }
 0x599   :  { %1293 = vadd.xlane.f32.xlu2 %v1292_v12 }
 0x5a1   :  { %1314 = vadd.xlane.f32.xlu2 %v1313_v30 }
 0x60b   :  { %v1301_v52 = vpop.xlane.xlu0 %1300  ;;  %v1308_v56 = vpop.xlane.xlu1 %1307 }
 0x60c   :  { %v1294_v35 = vpop.xlane.xlu2 %1293  ;;  %v1302_v29 = vmul.f32 %v2132_v61, %v1301_v52  ;;  %v1303_v0 = vmul.f32 %v2135_v7, %v1301_v52  ;;  %v1305_v54 = vmul.f32 %v2199_v9, %v1301_v52  ;;  %v1309_v32 = vmul.f32 %v2146_v3, %v1308_v56 }
 0x60d   :  { %v1295_v57 = vmul.f32 %v2138_v55, %v1294_v35  ;;  %v1296_v48 = vmul.f32 %v2141_v1, %v1294_v35  ;;  %v1298_v8 = vmul.f32 %v2202_v21, %v1294_v35  ;;  %v1310_v16 = vmul.f32 %v2149_v63, %v1308_v56 }
 0x60e   :  { %v1312_v61 = vmul.f32 %v2153_v24, %v1308_v56  ;;  %v1311_v46 = vmul.f32 %v2175_v39, %v1308_v56  ;;  %v1304_v27 = vmul.f32 %v2225_v58, %v1301_v52  ;;  %v1297_v47 = vmul.f32 %v2228_v15, %v1294_v35 }
 0x60f   :  { %v1320_v20 = vadd.f32 %v1302_v29, %v1295_v57  ;;  %v1321_v44 = vadd.f32 %v1303_v0, %v1296_v48  ;;  %v1323_v63 = vadd.f32 %v1305_v54, %v1298_v8  ;;  %v248_v0 = vadd.f32 %v247_v53, %v1990_v36 }
 0x610   :  { %v1322_v29 = vadd.f32 %v1304_v27, %v1297_v47 }
 0x614   :  { %v1315_v49 = vpop.xlane.xlu2 %1314 }
 0x615   :  { %v1316_v7 = vmul.f32 %v2156_v45, %v1315_v49  ;;  %v1317_v55 = vmul.f32 %v2159_v28, %v1315_v49  ;;  %v1319_v1 = vmul.f32 %v2162_v18, %v1315_v49  ;;  %v50_v18 = vld [vmem:[%s2386_s0 + $0x48] sm:$0xff]  ;;  %v1318_v17 = vmul.f32 %v2221_v51, %v1315_v49 }
 0x616   :  { %1568 = vmatmul.msk.f32.gmra.mxu2 %vm72_vm5, %v50_v18  ;;  %1579 = vmatmul.msk.f32.gmra.mxu3 %vm72_vm5, %v50_v18 }
 0x617   :  { %v1324_v3 = vadd.f32 %v1316_v7, %v1309_v32  ;;  %v1325_v31 = vadd.f32 %v1317_v55, %v1310_v16  ;;  %v1327_v22 = vadd.f32 %v1319_v1, %v1312_v61  ;;  %1546 = vmatmul.msk.f32.gmra.mxu0 %vm72_vm5, %v50_v18  ;;  %1557 = vmatmul.msk.f32.gmra.mxu1 %vm72_vm5, %v50_v18 }
 0x618   :  { %v1326_v12 = vadd.f32 %v1318_v17, %v1311_v46 }
 0x619   :  { %v1328_v33 = vadd.f32 %v1324_v3, %v1320_v20  ;;  %v1329_v34 = vadd.f32 %v1325_v31, %v1321_v44  ;;  %v1331_v25 = vadd.f32 %v1327_v22, %v1323_v63 }
 0x61a   :  { %v1330_v57 = vadd.f32 %v1326_v12, %v1322_v29 }
 0x61b   :  { %v1336_v24 = vadd.f32 %v1328_v33, %v154_v50  ;;  %v1337_v40 = vadd.f32 %v1329_v34, %v201_v13  ;;  %v1339_v45 = vadd.f32 %v1331_v25, %v295_v43 }
 0x61c   :  { %v1338_v56 = vadd.f32 %v1330_v57, %v248_v0  ;;  %v1804_v57 = vld [vmem:[#allocation4 + $0x20] sm:$0xff] }
 0x61d   :  { %v1615_v14 = vmul.f32 -1.442695, %v1336_v24  ;;  %v1616_v28 = vmul.f32 -1.442695, %v1337_v40  ;;  %v1617_v37 = vmul.f32 -1.442695, %v1339_v45 }
 0x61f   :  { %1756 = vpow2.f32 %v1615_v14 }
 0x620   :  { %1758 = vpow2.f32 %v1616_v28 }
 0x621   :  { %1760 = vpow2.f32 %v1617_v37 }
 0x625   :  { %v1757_v60 = vpop.eup %1756 }
 0x626   :  { %v1759_v6 = vpop.eup %1758  ;;  %v1343_v59 = vadd.f32 1.0, %v1757_v60 }
 0x627   :  { %v1761_v26 = vpop.eup %1760  ;;  %v1362_v30 = vadd.f32 1.0, %v1759_v6 }
 0x628   :  { %1762 = vrcp.f32 %v1343_v59  ;;  %v1382_v48 = vadd.f32 1.0, %v1761_v26  ;;  %v1353_v32 = vand.u32 2147483647, %v1343_v59  ;;  %v1355_v16 = vand.u32 2147483648, %v1343_v59 }
 0x629   :  { %1764 = vrcp.f32 %v1362_v30  ;;  %v1374_v49 = vand.u32 2147483648, %v1362_v30  ;;  %v1372_v55 = vand.u32 2147483647, %v1362_v30  ;;  %vm1349_vm13 = vweird.f32 %v1343_v59 }
 0x62a   :  { %1766 = vrcp.f32 %v1382_v48  ;;  %vm1368_vm14 = vweird.f32 %v1362_v30  ;;  %v1356_v13 = vor.u32 1.1754944e-38, %v1355_v16  ;;  %vm1354_vm1 = vcmp.eq.f32.partialorder %v1353_v32, 8.507059e+37 }
 0x62b   :  { %1768 = vtanh.f32 %v1338_v56  ;;  %v1375_v43 = vor.u32 1.1754944e-38, %v1374_v49  ;;  %vm1373_vm2 = vcmp.eq.f32.partialorder %v1372_v55, 8.507059e+37  ;;  %v1394_v14 = vand.u32 2147483648, %v1382_v48  ;;  %v1807_v56 = vld [vmem:[#allocation4 + $0x8] sm:$0xff] }
 0x62c   :  { %vm1388_vm4 = vweird.f32 %v1382_v48  ;;  %v1392_v28 = vand.u32 2147483647, %v1382_v48 }
 0x62d   :  { %v1395_v18 = vor.u32 1.1754944e-38, %v1394_v14 }
 0x62e   :  { %v1763_v39 = vpop.eup %1762  ;;  %vm1393_vm7 = vcmp.eq.f32.partialorder %v1392_v28, 8.507059e+37 }
 0x62f   :  { %v1765_v52 = vpop.eup %1764  ;;  %v1345_v54 = vmul.f32 %v1763_v39, %v1343_v59  ;;  %vm1350_vm5 = vweird.f32 %v1763_v39 }
 0x630   :  { %v1364_v35 = vmul.f32 %v1765_v52, %v1362_v30  ;;  %v1767_v2 = vpop.eup %1766  ;;  %vm1369_vm12 = vweird.f32 %v1765_v52  ;;  %vm1351_vm15 = vmor %vm1349_vm13, %vm1350_vm5 }
 0x631   :  { %v1346_v8 = vsub.f32 1.0, %v1345_v54  ;;  %v1384_v61 = vmul.f32 %v1767_v2, %v1382_v48  ;;  %vm1370_vm0 = vmor %vm1368_vm14, %vm1369_vm12  ;;  %v1769_v31 = vpop.eup %1768  ;;  %vm1389_vm3 = vweird.f32 %v1767_v2  ;;  %v1805_v48 = vld [vmem:[#allocation4 + $0x28] sm:$0xff] }
 0x632   :  { %v1365_v38 = vsub.f32 1.0, %v1364_v35  ;;  %vm1390_vm6 = vmor %vm1388_vm4, %vm1389_vm3  ;;  %vm1529_vm3 = vcmask 7168  }
 0x633   :  { %v1347_v50 = vmul.f32 %v1763_v39, %v1346_v8  ;;  %v1385_v20 = vsub.f32 1.0, %v1384_v61 }
 0x634   :  { %v1366_v7 = vmul.f32 %v1765_v52, %v1365_v38  ;;  %v1809_v38 = vld [vmem:[#allocation4 + $0x48] sm:$0xff] }
 0x635   :  { %v1348_v1 = vadd.f32 %v1763_v39, %v1347_v50  ;;  %v1386_v25 = vmul.f32 %v1767_v2, %v1385_v20  ;;  %v1810_v50 = vld [vmem:[#allocation4 + $0x58] sm:$0xff] }
 0x636   :  { %v1367_v44 = vadd.f32 %v1765_v52, %v1366_v7  ;;  %v1811_v7 = vld [vmem:[#allocation4 + $0x60] sm:$0xff] }
 0x637   :  { %v1352_v3 = vsel %vm1351_vm15, %v1763_v39, %v1348_v1  ;;  %v1387_v45 = vadd.f32 %v1767_v2, %v1386_v25  ;;  %v1806_v39 = vld [vmem:[#allocation4] sm:$0xff]  ;;  %v1812_v1 = vld [vmem:[#allocation4 + $0x68] sm:$0xff] }
 0x638   :  { %v1357_v63 = vsel %vm1354_vm1, %v1356_v13, %v1352_v3  ;;  %v1371_v22 = vsel %vm1370_vm0, %v1765_v52, %v1367_v44  ;;  %v1813_v13 = vld [vmem:[#allocation4 + $0x78] sm:$0xff] }
 0x639   :  { %v1376_v33 = vsel %vm1373_vm2, %v1375_v43, %v1371_v22  ;;  %v1399_v34 = vmul.f32 %v1769_v31, %v1357_v63  ;;  %v1391_v37 = vsel %vm1390_vm6, %v1767_v2, %v1387_v45 }
 0x63a   :  { %v1398_v24 = vmul.f32 %v1376_v33, %v2315_v19  ;;  %v1396_v46 = vsel %vm1393_vm7, %v1395_v18, %v1391_v37  ;;  %v1618_v19 = vld [vmem:[%s2390_s4 + $0x40] sm:$0xff] }
 0x63c   :  { %v2356_v40 = vadd.f32 %v1399_v34, %v1398_v24 }
 0x63e   :  { %1770 = vtanh.f32 %v2356_v40 }
 0x644   :  { %v1771_v17 = vpop.eup %1770 }
 0x645   :  { %v1402_v27 = vmul.f32 %v1771_v17, %v1396_v46  ;;  %v1814_v17 = vld [vmem:[#allocation4 + $0x50] sm:$0xff] }
 0x647   :  { %v1421_v47 = vmul.f32 %v1886_v4, %v1402_v27  ;;  %v1414_v60 = vmul.f32 %v1900_v11, %v1402_v27  ;;  %v1407_v6 = vmul.f32 %v1888_v5, %v1402_v27  ;;  %v1405_v59 = vmul.f32 %v1618_v19, %v1402_v27 }
 0x648   :  { %v1428_v26 = vmul.f32 %v1898_v10, %v1402_v27  ;;  %v1808_v10 = vld [vmem:[#allocation4 + $0x40] sm:$0xff] }
 0x649   :  { %1422 = vadd.xlane.f32.xlu2 %v1421_v47  ;;  %1415 = vadd.xlane.f32.xlu1 %v1414_v60  ;;  %v2366_v12 = vadd.f32 %v1405_v59, %v2325_v23 }
 0x64a   :  { %1408 = vadd.xlane.f32.xlu0 %v1407_v6 }
 0x652   :  { %1429 = vadd.xlane.f32.xlu0 %v1428_v26 }
 0x694   :  { %v156_v0 = vpop.f32.mrf.mxu0  ;;  %v203_v35 = vpop.f32.mrf.mxu1 }
 0x695   :  { %v157_v49 = vadd.f32 %v156_v0, %v1948_v41 }
 0x699   :  { %v297_v8 = vpop.f32.mrf.mxu3  ;;  %v250_v0 = vpop.f32.mrf.mxu2 }
 0x69a   :  { %v298_v3 = vadd.f32 %v297_v8, %v1966_v62 }
 0x6bc   :  { %v1416_v53 = vpop.xlane.xlu1 %1415  ;;  %v1423_v29 = vpop.xlane.xlu2 %1422 }
 0x6bd   :  { %v1409_v30 = vpop.xlane.xlu0 %1408  ;;  %v1417_v4 = vmul.f32 %v1804_v57, %v1416_v53  ;;  %v1418_v11 = vmul.f32 %v1805_v48, %v1416_v53  ;;  %v1420_v54 = vmul.f32 %v2199_v9, %v1416_v53  ;;  %v1424_v2 = vmul.f32 %v1808_v10, %v1423_v29 }
 0x6be   :  { %v1410_v5 = vmul.f32 %v1806_v39, %v1409_v30  ;;  %v1411_v52 = vmul.f32 %v1807_v56, %v1409_v30  ;;  %v1413_v23 = vmul.f32 %v2202_v21, %v1409_v30  ;;  %v1425_v32 = vmul.f32 %v1809_v38, %v1423_v29 }
 0x6bf   :  { %v1427_v61 = vmul.f32 %v1810_v50, %v1423_v29  ;;  %v204_v21 = vadd.f32 %v203_v35, %v1950_v42  ;;  %v1426_v62 = vmul.f32 %v1814_v17, %v1423_v29  ;;  %v1419_v46 = vmul.f32 %v2225_v58, %v1416_v53 }
 0x6c0   :  { %v1435_v9 = vadd.f32 %v1417_v4, %v1410_v5  ;;  %v1436_v43 = vadd.f32 %v1418_v11, %v1411_v52  ;;  %v1438_v33 = vadd.f32 %v1420_v54, %v1413_v23  ;;  %v1412_v27 = vmul.f32 %v2228_v15, %v1409_v30 }
 0x6c1   :  { %v251_v4 = vadd.f32 %v250_v0, %v1990_v36 }
 0x6c2   :  { %v1437_v57 = vadd.f32 %v1419_v46, %v1412_v27 }
 0x6c5   :  { %v1430_v16 = vpop.xlane.xlu0 %1429 }
 0x6c6   :  { %v1431_v55 = vmul.f32 %v1811_v7, %v1430_v16  ;;  %v1432_v20 = vmul.f32 %v1812_v1, %v1430_v16  ;;  %v1434_v44 = vmul.f32 %v1813_v13, %v1430_v16  ;;  %v1433_v42 = vmul.f32 %v2221_v51, %v1430_v16 }
 0x6c8   :  { %v1439_v31 = vadd.f32 %v1431_v55, %v1424_v2  ;;  %v1440_v63 = vadd.f32 %v1432_v20, %v1425_v32  ;;  %v1442_v22 = vadd.f32 %v1434_v44, %v1427_v61  ;;  %v1441_v60 = vadd.f32 %v1433_v42, %v1426_v62 }
 0x6ca   :  { %v1443_v34 = vadd.f32 %v1439_v31, %v1435_v9  ;;  %v1444_v41 = vadd.f32 %v1440_v63, %v1436_v43  ;;  %v1446_v25 = vadd.f32 %v1442_v22, %v1438_v33  ;;  %v1445_v48 = vadd.f32 %v1441_v60, %v1437_v57  ;;  %v1622_v33 = vld [vmem:[%s2390_s4 + $0x48] sm:$0xff] }
 0x6cc   :  { %v1451_v24 = vadd.f32 %v1443_v34, %v157_v49  ;;  %v1452_v45 = vadd.f32 %v1444_v41, %v204_v21  ;;  %v1454_v14 = vadd.f32 %v1446_v25, %v298_v3  ;;  %v1453_v11 = vadd.f32 %v1445_v48, %v251_v4  ;;  %v1627_v25 = vld [vmem:[#allocation3] ss:$0 sm:$0xff] }
 0x6ce   :  { %v1619_v28 = vmul.f32 -1.442695, %v1451_v24  ;;  %v1620_v37 = vmul.f32 -1.442695, %v1452_v45  ;;  %v1621_v18 = vmul.f32 -1.442695, %v1454_v14 }
 0x6d0   :  { %1772 = vpow2.f32 %v1619_v28 }
 0x6d1   :  { %1774 = vpow2.f32 %v1620_v37 }
 0x6d2   :  { %1776 = vpow2.f32 %v1621_v18 }
 0x6d6   :  { %v1773_v19 = vpop.eup %1772 }
 0x6d7   :  { %v1775_v47 = vpop.eup %1774  ;;  %v1458_v6 = vadd.f32 1.0, %v1773_v19 }
 0x6d8   :  { %v1777_v59 = vpop.eup %1776  ;;  %v1477_v26 = vadd.f32 1.0, %v1775_v47 }
 0x6d9   :  { %1778 = vrcp.f32 %v1458_v6  ;;  %v1497_v51 = vadd.f32 1.0, %v1777_v59  ;;  %v1468_v56 = vand.u32 2147483647, %v1458_v6  ;;  %v1470_v52 = vand.u32 2147483648, %v1458_v6 }
 0x6da   :  { %1780 = vrcp.f32 %v1477_v26  ;;  %v1489_v54 = vand.u32 2147483648, %v1477_v26  ;;  %v1487_v36 = vand.u32 2147483647, %v1477_v26  ;;  %vm1464_vm10 = vweird.f32 %v1458_v6 }
 0x6db   :  { %1782 = vrcp.f32 %v1497_v51  ;;  %vm1483_vm11 = vweird.f32 %v1477_v26  ;;  %v1471_v38 = vor.u32 1.1754944e-38, %v1470_v52  ;;  %vm1469_vm13 = vcmp.eq.f32.partialorder %v1468_v56, 8.507059e+37 }
 0x6dc   :  { %1784 = vtanh.f32 %v1453_v11  ;;  %v1490_v16 = vor.u32 1.1754944e-38, %v1489_v54  ;;  %vm1488_vm14 = vcmp.eq.f32.partialorder %v1487_v36, 8.507059e+37  ;;  %v1509_v21 = vand.u32 2147483648, %v1497_v51 }
 0x6dd   :  { %vm1503_vm0 = vweird.f32 %v1497_v51  ;;  %v1507_v43 = vand.u32 2147483647, %v1497_v51 }
 0x6de   :  { %v1510_v31 = vor.u32 1.1754944e-38, %v1509_v21 }
 0x6df   :  { %v1779_v29 = vpop.eup %1778  ;;  %vm1508_vm2 = vcmp.eq.f32.partialorder %v1507_v43, 8.507059e+37 }
 0x6e0   :  { %v1781_v58 = vpop.eup %1780  ;;  %v1460_v53 = vmul.f32 %v1779_v29, %v1458_v6  ;;  %vm1465_vm8 = vweird.f32 %v1779_v29 }
 0x6e1   :  { %v1479_v15 = vmul.f32 %v1781_v58, %v1477_v26  ;;  %v1783_v39 = vpop.eup %1782  ;;  %vm1484_vm9 = vweird.f32 %v1781_v58  ;;  %vm1466_vm5 = vmor %vm1464_vm10, %vm1465_vm8 }
 0x6e2   :  { %v1461_v30 = vsub.f32 1.0, %v1460_v53  ;;  %v1499_v35 = vmul.f32 %v1783_v39, %v1497_v51  ;;  %vm1485_vm12 = vmor %vm1483_vm11, %vm1484_vm9  ;;  %v1785_v50 = vpop.eup %1784  ;;  %vm1504_vm15 = vweird.f32 %v1783_v39 }
 0x6e3   :  { %v1480_v5 = vsub.f32 1.0, %v1479_v15  ;;  %vm1505_vm1 = vmor %vm1503_vm0, %vm1504_vm15 }
 0x6e4   :  { %v1462_v23 = vmul.f32 %v1779_v29, %v1461_v30  ;;  %v1500_v2 = vsub.f32 1.0, %v1499_v35 }
 0x6e5   :  { %v1481_v8 = vmul.f32 %v1781_v58, %v1480_v5 }
 0x6e6   :  { %v1463_v10 = vadd.f32 %v1779_v29, %v1462_v23  ;;  %v1501_v20 = vmul.f32 %v1783_v39, %v1500_v2 }
 0x6e7   :  { %v1482_v32 = vadd.f32 %v1781_v58, %v1481_v8 }
 0x6e8   :  { %v1467_v49 = vsel %vm1466_vm5, %v1779_v29, %v1463_v10  ;;  %v1502_v9 = vadd.f32 %v1783_v39, %v1501_v20 }
 0x6e9   :  { %v1472_v61 = vsel %vm1469_vm13, %v1471_v38, %v1467_v49  ;;  %v1486_v7 = vsel %vm1485_vm12, %v1781_v58, %v1482_v32 }
 0x6ea   :  { %v1491_v55 = vsel %vm1488_vm14, %v1490_v16, %v1486_v7  ;;  %v1514_v1 = vmul.f32 %v1785_v50, %v1472_v61  ;;  %v1506_v3 = vsel %vm1505_vm1, %v1783_v39, %v1502_v9 }
 0x6eb   :  { %v1513_v13 = vmul.f32 %v1491_v55, %v2356_v40  ;;  %v1511_v22 = vsel %vm1508_vm2, %v1510_v31, %v1506_v3 }
 0x6ed   :  { %v1515_v44 = vadd.f32 %v1514_v1, %v1513_v13 }
 0x6ef   :  { %1786 = vtanh.f32 %v1515_v44 }
 0x6f5   :  { %v1787_v63 = vpop.eup %1786 }
 0x6f6   :  { %v1517_v34 = vmul.f32 %v1787_v63, %v1511_v22 }
 0x6f8   :  { %v1520_v41 = vmul.f32 %v1622_v33, %v1517_v34 }
 0x6fa   :  { %v1521_v40 = vadd.f32 %v1520_v41, %v2366_v12 }
 0x6fc   :  { %1522 = vadd.xlane.f32.xlu1 %v1521_v40 }
 0x76f   :  { %v1523_v24 = vpop.xlane.xlu1 %1522 }
 0x770   :  { %v1528_v45 = vadd.f32 %v1627_v25, %v1523_v24 }
 0x772   :  { %1530 = vst.msk [vmem:[%s2392_s6] sm:$0xff] %vm1529_vm3, %v1528_v45 }
 0x773   :  { %1535 = vsyncpa [#allocation5], 1 }

</bundles_post_ra>
